<compile_context>
chip_gen: v7x
topology: tpu7x:2x2x1
jax: 0.10.0
libtpu: 0.0.40
codegen_flags: <defaults>
</compile_context>

<pallas_src>
import math
import functools

import numpy as np
import jax
import jax.numpy as jnp
from jax.experimental import pallas as pl
from jax.experimental.pallas import tpu as pltpu


def _round_up(x, m):
    return (x + m - 1) // m * m


def _bits_to_unit(bits):
    """Raw 32-bit PRNG output -> float32 uniform in [0, 1)."""
    if bits.dtype != jnp.int32:
        bits = pltpu.bitcast(bits, jnp.int32)
    f = pltpu.bitcast((bits & jnp.int32(0x007FFFFF)) | jnp.int32(0x3F800000),
                      jnp.float32)                      # [1, 2)
    return f - 1.0


def _sine_gen_kernel(*refs, rp, sine_amp, noise_std, voiced_threshold,
                     onchip_noise, emit_noise):
    """One (batch, q-tile) block.

    refs (onchip_noise=True) : seed_ref, E_ref, x_ref, sine_ref[, noise_ref]
    refs (onchip_noise=False):           E_ref, x_ref, z_ref, sine_ref[, noise_ref]

    x_ref block  : (1, Kp, td)  frame-rate rows = [phase(dim); diff_b(dim);
                                                   diff_f(dim); f0_poly(up); pad]
    E_ref block  : (2*rp, Kp)   constant fold/interpolation matrix
    out blocks   : (1, rp, td)  rows = (harmonic d, polyphase r) folded, cols = q
    """
    if onchip_noise:
        seed_ref, e_ref, x_ref = refs[0], refs[1], refs[2]
        z_ref = None
    else:
        e_ref, x_ref, z_ref = refs[0], refs[1], refs[2]
        seed_ref = None
    sine_ref = refs[3]
    noise_ref = refs[4] if emit_noise else None

    x = x_ref[0]                                              # (Kp, td)
    # Polyphase upsample + f0 replication as one tiny matmul on the idle MXU.
    mm = jnp.dot(e_ref[...], x, preferred_element_type=jnp.float32)   # (2*rp, td)
    phase = mm[:rp]                                           # (rp, td)
    f0r = mm[rp:]                                             # (rp, td)

    sines = jnp.sin(phase) * sine_amp
    voiced = f0r > voiced_threshold
    namp = jnp.where(voiced, noise_std, sine_amp / 3.0)

    if onchip_noise:
        # Gaussian noise on-chip: both Box-Muller branches, half the lanes each,
        # concatenated at a vreg-aligned lane offset (td is a multiple of 256).
        pltpu.prng_seed(seed_ref[0], pl.program_id(0), pl.program_id(1))
        half = phase.shape[-1] // 2
        u1 = 1.0 - _bits_to_unit(pltpu.prng_random_bits((rp, half)))   # (0, 1]
        u2 = _bits_to_unit(pltpu.prng_random_bits((rp, half)))         # [0, 1)
        r = jnp.sqrt(-2.0 * jnp.log(u1))
        t = (2.0 * math.pi) * u2
        z = jnp.concatenate([r * jnp.cos(t), r * jnp.sin(t)], axis=-1)  # (rp, td)
    else:
        z = z_ref[0]                                          # (rp, td)

    noise = namp * z
    sine_ref[0] = (jnp.where(voiced, sines, 0.0) + noise).astype(sine_ref.dtype)
    if emit_noise:
        noise_ref[0] = noise.astype(noise_ref.dtype)


class SineGenPallas:
    """Pallas equivalent of SineGen (flag_for_pulse=False path)."""
    # TODO(synk): flag_for_pulse=True branch (per-voiced-segment phase reset with
    # data-dependent boolean indexing) is not implemented; module default is False.

    def __init__(self, samp_rate, upsample_scale, harmonic_num=0,
                 sine_amp=0.1, noise_std=0.003, voiced_threshold=0,
                 flag_for_pulse=False, onchip_noise=None):
        assert not flag_for_pulse, "flag_for_pulse=True path not implemented"
        self.sampling_rate = samp_rate
        self.upsample_scale = int(upsample_scale)
        self.harmonic_num = harmonic_num
        self.dim = harmonic_num + 1
        self.sine_amp = sine_amp
        self.noise_std = noise_std
        self.voiced_threshold = voiced_threshold
        # None -> auto: on-chip PRNG only on a real TPU backend (pltpu.prng_seed has
        # no CPU/interpret lowering), otherwise stream jax.random.normal noise.
        self.onchip_noise = onchip_noise

    def __call__(self, f0, key, *, return_noise=True, out_dtype=jnp.float32):
        B, L, _ = f0.shape
        up = self.upsample_scale
        dim = self.dim
        assert L % up == 0, "length must be a multiple of upsample_scale"
        Lq = L // up
        sr = float(self.sampling_rate)

        onchip = self.onchip_noise
        if onchip is None:
            onchip = jax.default_backend() == "tpu"

        # ---------------- frame-rate prep: O(L/up) plain-JAX glue ----------------
        k_rand, k_noise = jax.random.split(key)

        # torch downsample (scale 1/up, linear, align_corners=False): output j uses
        # full-rate taps up*j+k0 and up*j+k0+1 with fixed weights (w0, w1).
        c = up / 2.0 - 0.5
        k0 = int(math.floor(c))
        w1 = float(c - k0)
        w0 = 1.0 - w1

        f0_flat = f0[:, :, 0]                                     # (B, L)
        harm = jnp.arange(1, dim + 1, dtype=jnp.float32)          # (dim,)
        t0 = f0_flat[:, k0::up]                                   # (B, Lq)
        t1 = t0 if up == 1 else f0_flat[:, k0 + 1::up]            # w1 == 0 when up == 1
        rad0 = (t0[:, None, :] * harm[None, :, None]) / sr % 1.0  # (B, dim, Lq)
        rad1 = (t1[:, None, :] * harm[None, :, None]) / sr % 1.0
        if k0 == 0:
            # full-rate index 0 is a downsample tap only when up <= 2; torch adds
            # rand_ini there before interpolating (for up >= 3 it has no effect).
            rand_ini = jax.random.uniform(k_rand, (B, dim), dtype=jnp.float32)
            rand_ini = rand_ini.at[:, 0].set(0.0)
            rad0 = rad0.at[:, :, 0].add(rand_ini)
        rad_d = w0 * rad0 + w1 * rad1                             # (B, dim, Lq)

        two_pi = 2.0 * math.pi
        # Range-reduced cumulative phase (drops only integer multiples of 2*pi, so
        # sin() is unchanged w.r.t. the torch formula but stays accurate for long L).
        s = jnp.cumsum((rad_d * up) % 1.0, axis=-1)
        base = two_pi * (s % 1.0)                                 # (B, dim, Lq)
        # TRUE per-frame phase increments used by the linear interpolation
        # (must not be range-reduced), with torch's edge clamp baked in.
        dphi = (two_pi * up) * rad_d
        zcol = jnp.zeros_like(dphi[:, :, :1])
        diff_b = jnp.concatenate([zcol, dphi[:, :, 1:]], axis=-1)  # P[q]-P[q-1]
        diff_f = jnp.concatenate([dphi[:, :, 1:], zcol], axis=-1)  # P[q+1]-P[q]
        # raw f0 in polyphase layout for the voiced mask / noise amplitude
        f0_poly = f0_flat.reshape(B, Lq, up).transpose(0, 2, 1)    # (B, up, Lq)

        # ---------------- tiling: q on lanes, (dim, up) folded onto sublanes -----
        RP = _round_up(dim * up, 8)
        K_used = 3 * dim + up
        Kp = _round_up(K_used, 8)

        td = min(4096, _round_up(Lq, 256))          # big lane-dense tiles
        if B == 1 and Lq > 256:
            # v7x has 2 TensorCores: make sure there are >= 2 parallel grid blocks.
            while td > 256 and Lq <= td:
                td = max(256, (td // 2) // 256 * 256)
        Lp = _round_up(Lq, td)                      # pad columns up to a tile multiple
        nq = Lp // td

        xin = jnp.concatenate([base, diff_b, diff_f, f0_poly], axis=1)  # (B, K_used, Lq)
        xin = jnp.pad(xin, ((0, 0), (0, Kp - K_used), (0, Lp - Lq)))

        # Constant fold/interpolation matrix:
        #   rows [0, dim*up)          : phase row (d*up+r) = phase[d] + delta_r * diff
        #   rows [RP, RP+dim*up)      : f0 replication row (d*up+r) = f0_poly[r]
        E = np.zeros((2 * RP, Kp), np.float32)
        for d in range(dim):
            for r in range(up):
                row = d * up + r
                delta = (r + 0.5) / up - 0.5
                E[row, d] = 1.0
                if delta < 0.0:
                    E[row, dim + d] = delta          # use backward diff
                else:
                    E[row, 2 * dim + d] = delta      # use forward diff
                E[RP + row, 3 * dim + r] = 1.0
        E = jnp.asarray(E)

        kernel = functools.partial(
            _sine_gen_kernel,
            rp=RP,
            sine_amp=float(self.sine_amp),
            noise_std=float(self.noise_std),
            voiced_threshold=float(self.voiced_threshold),
            onchip_noise=onchip,
            emit_noise=return_noise,
        )

        out_shape = [jax.ShapeDtypeStruct((B, RP, Lp), out_dtype)]
        out_specs = [pl.BlockSpec((1, RP, td), lambda b, q, *_: (b, 0, q))]
        if return_noise:
            out_shape.append(jax.ShapeDtypeStruct((B, RP, Lp), out_dtype))
            out_specs.append(pl.BlockSpec((1, RP, td), lambda b, q, *_: (b, 0, q)))

        in_specs = [
            pl.BlockSpec((2 * RP, Kp), lambda b, q, *_: (0, 0)),
            pl.BlockSpec((1, Kp, td), lambda b, q, *_: (b, 0, q)),
        ]
        if onchip:
            num_pref = 1
            seed = jax.random.randint(k_noise, (1,), 0, jnp.iinfo(jnp.int32).max,
                                      dtype=jnp.int32)
            args = (seed, E, xin)
        else:
            num_pref = 0
            z = jax.random.normal(k_noise, (B, RP, Lp), dtype=jnp.float32)
            in_specs.append(pl.BlockSpec((1, RP, td), lambda b, q: (b, 0, q)))
            args = (E, xin, z)

        n_out = 1 + int(return_noise)
        total = B * RP * Lp
        cost = pl.CostEstimate(
            flops=2 * (2 * RP) * Kp * Lp * B + 12 * total,
            transcendentals=3 * total,
            bytes_accessed=4 * (B * Kp * Lp + n_out * total
                                + (0 if onchip else total)),
        )

        outs = pl.pallas_call(
            kernel,
            out_shape=tuple(out_shape),
            grid_spec=pltpu.PrefetchScalarGridSpec(
                num_scalar_prefetch=num_pref,
                grid=(B, nq),
                in_specs=in_specs,
                out_specs=out_specs,
            ),
            compiler_params=pltpu.CompilerParams(
                dimension_semantics=("parallel", "parallel"),
                vmem_limit_bytes=32 * 1024 * 1024,
            ),
            cost_estimate=cost,
        )(*args)

        # polyphase (B, (d,r), q) -> (B, L, dim).  A single full-size XLA transpose,
        # required by the module's (B, L, dim) contract.
        # TODO(synk): let downstream (SourceModuleHnNSF linear+tanh) consume the
        # polyphase (B, dim*up, Lq) layout directly to avoid this transpose.
        def depoly(x):
            x = x[:, :dim * up, :Lq].reshape(B, dim, up, Lq)
            return x.transpose(0, 3, 2, 1).reshape(B, L, dim)

        if return_noise:
            sine_p, noise_p = outs
            sine_waves = depoly(sine_p)
            noise = depoly(noise_p)
        else:
            (sine_p,) = outs
            sine_waves = depoly(sine_p)
            noise = None
        uv = (f0 > self.voiced_threshold).astype(jnp.float32)   # (B, L, 1)
        return sine_waves, uv, noise


def _reference_det_part(f0, gen):
    """Pure-JAX re-implementation of the torch SineGen deterministic part,
    uv * sine_amp * sin(interpolated phase); used only for the self-test.
    rand_ini is omitted: for upsample_scale >= 3 it provably has no effect
    (full-rate index 0 is never a downsample tap)."""
    B, L, _ = f0.shape
    up, dim = gen.upsample_scale, gen.dim
    sr = float(gen.sampling_rate)
    Lq = L // up
    harm = jnp.arange(1, dim + 1, dtype=jnp.float32)
    rad = (f0 * harm[None, None, :]) / sr % 1.0                 # (B, L, dim)
    # linear downsample, align_corners=False
    j = jnp.arange(Lq, dtype=jnp.float32)
    src = up * (j + 0.5) - 0.5
    i0 = jnp.floor(src).astype(jnp.int32)
    i1 = jnp.minimum(i0 + 1, L - 1)
    w = (src - i0.astype(jnp.float32))[None, :, None]
    rad_d = (1.0 - w) * rad[:, i0, :] + w * rad[:, i1, :]       # (B, Lq, dim)
    phase_d = jnp.cumsum(rad_d, axis=1) * (2.0 * math.pi * up)
    # linear upsample, align_corners=False
    t = jnp.arange(L, dtype=jnp.float32)
    srcu = jnp.maximum((t + 0.5) / up - 0.5, 0.0)
    q0 = jnp.floor(srcu).astype(jnp.int32)
    q1 = jnp.minimum(q0 + 1, Lq - 1)
    lam = (srcu - q0.astype(jnp.float32))[None, :, None]
    ph = (1.0 - lam) * phase_d[:, q0, :] + lam * phase_d[:, q1, :]
    uv = (f0 > gen.voiced_threshold).astype(jnp.float32)
    return uv * gen.sine_amp * jnp.sin(ph)


if __name__ == "__main__":
    key = jax.random.PRNGKey(0)
    k_f0, k_voiced, k_call = jax.random.split(key, 3)

    B, L = 2, 64
    harmonic_num = 8        # dim = 9, as used in StyleTTS
    upsample_scale = 4
    samp_rate = 16000
    dim = harmonic_num + 1

    # f0 in Hz; zero some frames to exercise the unvoiced path.
    f0 = jax.random.uniform(k_f0, (B, L, 1), minval=80.0, maxval=400.0)
    voiced = (jax.random.uniform(k_voiced, (B, L, 1)) > 0.25).astype(jnp.float32)
    f0 = f0 * voiced

    gen = SineGenPallas(samp_rate, upsample_scale, harmonic_num=harmonic_num)
    sine, uv, noise = gen(f0, k_call)
    jax.block_until_ready((sine, uv, noise))

    assert sine.shape == (B, L, dim)
    assert uv.shape == (B, L, 1)
    assert noise.shape == (B, L, dim)
    assert bool(jnp.all(jnp.isfinite(sine)))
    assert bool(jnp.all(jnp.isfinite(uv)))
    assert bool(jnp.all(jnp.isfinite(noise)))
    # voiced/unvoiced mask must match the threshold exactly
    assert bool(jnp.all(uv == (f0 > 0).astype(jnp.float32)))

    # deterministic part is a bounded, uv-gated sine
    det = sine - noise
    assert bool(jnp.all(jnp.abs(det) <= gen.sine_amp * uv + 1e-3))
    # unvoiced samples carry only noise
    assert bool(jnp.all(jnp.where(uv == 0.0, jnp.abs(det), 0.0) == 0.0))

    # compare the deterministic part against an independent pure-JAX reference of
    # the torch formula (noise-free, so the comparison is realization-independent)
    ref_det = _reference_det_part(f0, gen)
    err = float(jnp.max(jnp.abs(det - ref_det)))
    assert err < 5e-3, f"deterministic part mismatch vs reference: {err}"

    print("KERNEL_OK")
</pallas_src>

<mosaic_0001>
module attributes {stable_mosaic.version = 11 : i64} {
  func.func @_sine_gen_kernel(%arg0: i32, %arg1: i32, %arg2: memref<80x32xf32, #tpu.memory_space<vmem>>, %arg3: memref<1x32x256xf32, #tpu.memory_space<vmem>>, %arg4: memref<1x40x256xf32, #tpu.memory_space<vmem>>, %arg5: memref<1x40x256xf32, #tpu.memory_space<vmem>>, %arg6: memref<1x40x256xf32, #tpu.memory_space<vmem>>) attributes {dimension_semantics = [#tpu.dimension_semantics<parallel>, #tpu.dimension_semantics<parallel>], iteration_bounds = array<i64: 2, 1>, scalar_prefetch = 0 : i64, scratch_operands = 0 : i64, tpu.core_type = #tpu.core_type<tc>, window_params = [{pipeline_mode = #tpu.pipeline_mode<synchronous>, transform_indices = @transform_0, window_bounds = array<i64: 80, 32>}, {transform_indices = @transform_1, window_bounds = array<i64: 1, 32, 256>}, {transform_indices = @transform_2, window_bounds = array<i64: 1, 40, 256>}, {transform_indices = @transform_3, window_bounds = array<i64: 1, 40, 256>}, {transform_indices = @transform_4, window_bounds = array<i64: 1, 40, 256>}]} {
    %c0 = arith.constant 0 : index
    %c0_0 = arith.constant 0 : index
    %c0_1 = arith.constant 0 : index
    %0 = vector.load %arg3[%c0, %c0_0, %c0_1] : memref<1x32x256xf32, #tpu.memory_space<vmem>>, vector<1x32x256xf32>
    %1 = vector.shape_cast %0 : vector<1x32x256xf32> to vector<32x256xf32>
    %c0_2 = arith.constant 0 : index
    %c0_3 = arith.constant 0 : index
    %2 = vector.load %arg2[%c0_2, %c0_3] : memref<80x32xf32, #tpu.memory_space<vmem>>, vector<80x32xf32>
    %cst = arith.constant dense<0.000000e+00> : vector<80x256xf32>
    %3 = tpu.matmul %2, %1, %cst {dimension_numbers = #tpu.dot_dimension_numbers<[1], [0], [0], [1], [0, 0, 1, 1], [], []>} : vector<80x32xf32>, vector<32x256xf32>, vector<80x256xf32> -> vector<80x256xf32>
    %4 = vector.extract_strided_slice %3 {offsets = [0, 0], sizes = [40, 256], strides = [1, 1]} : vector<80x256xf32> to vector<40x256xf32>
    %5 = vector.extract_strided_slice %3 {offsets = [40, 0], sizes = [40, 256], strides = [1, 1]} : vector<80x256xf32> to vector<40x256xf32>
    %6 = math.sin %4 : vector<40x256xf32>
    %cst_4 = arith.constant 1.000000e-01 : f32
    %7 = vector.broadcast %cst_4 : f32 to vector<40x256xf32>
    %8 = arith.mulf %6, %7 : vector<40x256xf32>
    %cst_5 = arith.constant 0.000000e+00 : f32
    %9 = vector.broadcast %cst_5 : f32 to vector<40x256xf32>
    %10 = arith.cmpf ogt, %5, %9 : vector<40x256xf32>
    %cst_6 = arith.constant 3.000000e-03 : f32
    %cst_7 = arith.constant 0.0333333351 : f32
    %11 = vector.broadcast %cst_6 : f32 to vector<40x256xf32>
    %12 = vector.broadcast %cst_7 : f32 to vector<40x256xf32>
    %13 = arith.select %10, %11, %12 : vector<40x256xi1>, vector<40x256xf32>
    %c0_8 = arith.constant 0 : index
    %c0_9 = arith.constant 0 : index
    %c0_10 = arith.constant 0 : index
    %14 = vector.load %arg4[%c0_8, %c0_9, %c0_10] : memref<1x40x256xf32, #tpu.memory_space<vmem>>, vector<1x40x256xf32>
    %15 = vector.shape_cast %14 : vector<1x40x256xf32> to vector<40x256xf32>
    %16 = arith.mulf %13, %15 : vector<40x256xf32>
    %cst_11 = arith.constant 0.000000e+00 : f32
    %17 = vector.broadcast %cst_11 : f32 to vector<40x256xf32>
    %18 = arith.select %10, %8, %17 : vector<40x256xi1>, vector<40x256xf32>
    %19 = arith.addf %18, %16 : vector<40x256xf32>
    %c0_12 = arith.constant 0 : index
    %c0_13 = arith.constant 0 : index
    %c0_14 = arith.constant 0 : index
    %20 = vector.load %arg5[%c0_12, %c0_13, %c0_14] : memref<1x40x256xf32, #tpu.memory_space<vmem>>, vector<1x40x256xf32>
    %21 = vector.shape_cast %20 : vector<1x40x256xf32> to vector<40x256xf32>
    %22 = vector.shape_cast %19 : vector<40x256xf32> to vector<1x40x256xf32>
    tpu.vector_store %arg5[%c0_12, %c0_13, %c0_14], %22 {strides = array<i32>} : memref<1x40x256xf32, #tpu.memory_space<vmem>>, vector<1x40x256xf32>,
    %c0_15 = arith.constant 0 : index
    %c0_16 = arith.constant 0 : index
    %c0_17 = arith.constant 0 : index
    %23 = vector.load %arg6[%c0_15, %c0_16, %c0_17] : memref<1x40x256xf32, #tpu.memory_space<vmem>>, vector<1x40x256xf32>
    %24 = vector.shape_cast %23 : vector<1x40x256xf32> to vector<40x256xf32>
    %25 = vector.shape_cast %16 : vector<40x256xf32> to vector<1x40x256xf32>
    tpu.vector_store %arg6[%c0_15, %c0_16, %c0_17], %25 {strides = array<i32>} : memref<1x40x256xf32, #tpu.memory_space<vmem>>, vector<1x40x256xf32>,
    return
  }
  func.func @transform_0(%arg0: i32, %arg1: i32) -> (i32, i32) {
    %c0_i32 = arith.constant 0 : i32
    %c0_i32_0 = arith.constant 0 : i32
    %c0_i32_1 = arith.constant 0 : i32
    return %c0_i32, %c0_i32_0 : i32, i32
  }
  func.func @transform_1(%arg0: i32, %arg1: i32) -> (i32, i32, i32) {
    %c0_i32 = arith.constant 0 : i32
    %c0_i32_0 = arith.constant 0 : i32
    return %arg0, %c0_i32, %arg1 : i32, i32, i32
  }
  func.func @transform_2(%arg0: i32, %arg1: i32) -> (i32, i32, i32) {
    %c0_i32 = arith.constant 0 : i32
    %c0_i32_0 = arith.constant 0 : i32
    return %arg0, %c0_i32, %arg1 : i32, i32, i32
  }
  func.func @transform_3(%arg0: i32, %arg1: i32) -> (i32, i32, i32) {
    %c0_i32 = arith.constant 0 : i32
    %c0_i32_0 = arith.constant 0 : i32
    return %arg0, %c0_i32, %arg1 : i32, i32, i32
  }
  func.func @transform_4(%arg0: i32, %arg1: i32) -> (i32, i32, i32) {
    %c0_i32 = arith.constant 0 : i32
    %c0_i32_0 = arith.constant 0 : i32
    return %arg0, %c0_i32, %arg1 : i32, i32, i32
  }
}

</mosaic_0001>

<bundles_post_ra>
// kernel: tpu_custom_call.1
= control target key start
LH: loop header
LB: loop body
LE: loop exit
PB: predicated region body
PF: predicated region fallthrough
CT: control target
= control target key end

     0   :  { %10 = vsyncpa [#allocation3], 0  ;;  %s3536_s0 = inlined_call_operand.vmem [shape: f32[80,32], index: 0, kind: input, shape index: {}]   ;;  %s3537_s1 = inlined_call_operand.hbm [shape: f32[2,32,256], index: 1, kind: input, shape index: {}]   ;;  %s3538_s2 = inlined_call_operand.hbm [shape: f32[2,40,256], index: 2, kind: input, shape index: {}]   ;;  %s3539_s3 = inlined_call_operand.hbm [shape: f32[2,40,256], index: 3, kind: output, shape index: {0}]   ;;  %s3540_s4 = inlined_call_operand.hbm [shape: f32[2,40,256], index: 4, kind: output, shape index: {1}]  }
   0x1   :  { %12 = vsyncpa [#allocation3 + $0x1], 0 }
   0x2   :  { %13 = vsyncpa [#allocation6], 0 }
   0x3   :  { %15 = vsyncpa [#allocation6 + $0x1], 0 }
   0x4   :  { %16 = vsyncpa [#allocation4], 0 }
   0x5   :  { %18 = vsyncpa [#allocation4 + $0x1], 0 }
   0x6   :  { %19 = vsyncpa [#allocation9], 0 }
   0x7   :  { %21 = vsyncpa [#allocation9 + $0x1], 0  ;;  %s2253_s15 = smov 0   ;;  %s2255_s16 = smov 0  }
   0x8   :  { %s2257_s17 = smov 0   ;;  %s2259_s18 = smov 0  }
   0x9   :  { %s2261_s19 = smov 0   ;;  %s2263_s20 = smov 0  }
   0xa LB: > { %s1786_s21 = sadd.s32 4294967295, %s2210_s20   ;;  %s1787_s22 = sadd.s32 4294967294, %s2210_s20   ;;  %s2210_s20 = sphi %s2263_s20, %s27_s20   ;;  %s2206_s19 = sphi %s2261_s19, %s3651_s19   ;;  %s2202_s18 = sphi %s2259_s18, %s3650_s18   ;;  %s2198_s17 = sphi %s2257_s17, %s3649_s17   ;;  %s2194_s16 = sphi %s2255_s16, %s3648_s16   ;;  %s2190_s15 = sphi %s2253_s15, %s3647_s15  }
   0xb   : > { %s39_s23 = sadd.s32 1, %s2206_s19  ;;  %s69_s24 = sadd.s32 1, %s2198_s17 }
   0xc   : > { %p41_p0 = scmp.ge.s32.totalorder %s39_s23, 2  ;;  %p76_p1 = scmp.ne.s32.totalorder %s2198_s17, %s2194_s16 }
   0xd   : > { %p77_p2 = scmp.eq.s32.totalorder %s2210_s20, 0  ;;  %p82_p3 = scmp.ne.s32.totalorder %s2194_s16, %s2190_s15 }
   0xe   : > { %s3653_s23 = smov (%p41_p0, %s39_s23), 0  ;;  %p83_p5 = scmp.eq.s32.totalorder %s1786_s21, 0 }
   0xf   : > { %p2294_p4 = por %p77_p2, %p76_p1  ;;  %s64_s26 = ssub.s32 %s2206_s19, %s3653_s23 }
  0x10   : > { %p136_p6 = scmp.eq.s32.totalorder %s1786_s21, 1  ;;  %p67_p7 = scmp.eq.s32.totalorder %s64_s26, 0 }
  0x11   : > { %p2300_p8 = por %p83_p5, %p82_p3  ;;  %p142_p10 = scmp.eq.s32.totalorder %s1787_s22, 1 }
  0x12   : > { %p2304_p9 = por %p136_p6, %p76_p1  ;;  %p1930_p13 = scmp.lt.s32.totalorder %s2210_s20, 2 }
  0x13   : > { %s3573_s27 = scalar_select %p2300_p8, 1, 0 }
  0x14   : > { %s3574_s28 = scalar_select %p2304_p9, 1, 0 }
  0x15   : > { %s2309_s29 = scalar_select %p67_p7, %s2198_s17, %s69_s24  }
  0x16   : > { %p2311_p11 = por %p142_p10, %p82_p3  ;;  %s2318_s5 = sand.u32 1, %s2198_s17  }
  0x17   : > { %s1790_s6 = sshll.u32 %s2318_s5, 6  ;;  %s1850_s7 = sshll.u32 %s2206_s19, 10 }
  0x18   : > { %s3575_s30 = scalar_select %p2311_p11, 1, 0 }
  0x19   : > { %s2325_s10 = scalar_lea.hbm %s3537_s1, %s1850_s7  ;;  %s197_s11 = scalar_lea.vmem [#allocation2], %s1790_s6 }
  0x1a   : > { %s206_s12 = sshll.u32 %s197_s11, 4  ;;  %p2331_p0 = pnand %p1930_p13, %p2294_p4  ;;  %s2327_s12 = int_to_ptr.vmem [resolvable:$true] %s206_s12 }
  0x1b   : > { %s194_s14 = scalar_lea.sflag [#allocation3], %s2318_s5  ;;  %s2032_s21 = scalar_lea.hbm %s2325_s10, 1024 }
  0x1c   : > { %p2033_p2 = scmp.ne.s32.totalorder %s2325_s10, %s2032_s21  ;;  %p2034_p3 = pneg %p2331_p0 }
  0x1d   : > { %s2037_s25 = scalar_lea.hbm %s3537_s1, 2048  ;;  %p2038_p4 = scmp.lt.u32.totalorder %s2325_s10, %s3537_s1 }
  0x1e   : > { %p2035_p5 = pnand %p2034_p3, %p2033_p2  ;;  %p2039_p7 = scmp.lt.u32.totalorder %s2037_s25, %s2032_s21 }
  0x1f   : > { %p2041_p13 = scmp.lt.u32.totalorder %s2032_s21, %s2325_s10 }
  0x20   : > { %p2036_p6 = pneg %p2035_p5  ;;  %p2040_p10 = por %p2039_p7, %p2038_p4 }
  0x22   : > { %p2042_p12 = por %p2041_p13, %p2040_p10 }
  0x24   : > { %p2043_p1 = pnand %p2042_p12, %p2036_p6 }
  0x26   : > { %2046 = shalt.err (!%p2043_p1)
}
  0x27   : > { %s2047_s7 = scalar_lea.vmem %s2327_s12, 1024  ;;  %s2212_s8 = smov [#allocation2]  }
  0x28   : > { %p2048_p2 = scmp.ne.s32.totalorder %s2327_s12, %s2047_s7  ;;  %s2052_s9 = sshll.u32 %s2212_s8, 4  ;;  %s2053_s9 = int_to_ptr.vmem [resolvable:$false] %s2052_s9 }
  0x29   : > { %s2054_s11 = scalar_lea.vmem %s2053_s9, 2048  ;;  %p2055_p9 = scmp.lt.s32.totalorder %s2327_s12, %s2053_s9 }
  0x2a   : > { %p2050_p5 = pnand %p2048_p2, %p2034_p3  ;;  %p2056_p4 = scmp.lt.s32.totalorder %s2054_s11, %s2047_s7 }
  0x2c   : > { %p2051_p11 = pneg %p2050_p5  ;;  %p2057_p7 = por %p2056_p4, %p2055_p9 }
  0x2e   : > { %p2058_p10 = pnand %p2057_p7, %p2051_p11 }
  0x30   : > { %2061 = shalt.err (!%p2058_p10)
}
  0x31   : > { %s3542_s21 = smov 256   ;;  %s2214_s22 = smov 16  }
  0x32   : > { %1919 = dma.hbm_to_vmem [thread:$0]  (!%p2331_p0), %s2325_s10, 1024, %s2327_s12, %s194_s14, %s3542_s21, %s3542_s21, %s2214_s22  }
  0x33   : > { %p237_p9 = scmp.lt.s32.totalorder %s2210_s20, 3  ;;  %s1863_s24 = smul.u32 80, %s2318_s5 }
  0x34   : > { %p3577_p11 = scmp.ge.s32.totalorder %s2210_s20, 1  ;;  %s1864_s26 = smul.u32 1280, %s2206_s19 }
  0x35   : > { %s220_s9 = scalar_lea.vmem [#allocation5], %s1863_s24  ;;  %s217_s10 = scalar_lea.sflag [#allocation6], %s2318_s5 }
  0x36   : > { %p2371_p12 = pnand %p3577_p11, %p237_p9  ;;  %s2379_s8 = scalar_lea.hbm %s3538_s2, %s1864_s26 }
  0x37   : > { %s229_s11 = sshll.u32 %s220_s9, 4  ;;  %s2062_s12 = scalar_lea.hbm %s2379_s8, 1280  ;;  %s2381_s11 = int_to_ptr.vmem [resolvable:$true] %s229_s11 }
  0x38   : > { %p2063_p1 = scmp.ne.s32.totalorder %s2379_s8, %s2062_s12  ;;  %s2067_s26 = scalar_lea.hbm %s3538_s2, 2560 }
  0x39   : > { %p2068_p2 = scmp.lt.u32.totalorder %s2379_s8, %s3538_s2  ;;  %p2069_p5 = scmp.lt.u32.totalorder %s2067_s26, %s2062_s12 }
  0x3a   : > { %p2065_p6 = pnand %p2063_p1, %p2034_p3  ;;  %p2071_p7 = scmp.lt.u32.totalorder %s2062_s12, %s2379_s8 }
  0x3b   : > { %p2070_p4 = por %p2069_p5, %p2068_p2 }
  0x3c   : > { %p2066_p13 = pneg %p2065_p6 }
  0x3d   : > { %p2072_p10 = por %p2071_p7, %p2070_p4 }
  0x3f   : > { %p2073_p9 = pnand %p2072_p10, %p2066_p13 }
  0x41   : > { %2076 = shalt.err (!%p2073_p9)
}
  0x42   : > { %s2077_s24 = scalar_lea.vmem %s2381_s11, 1280  ;;  %s2215_s21 = smov [#allocation5]  }
  0x43   : > { %p2078_p11 = scmp.ne.s32.totalorder %s2381_s11, %s2077_s24  ;;  %s2082_s9 = sshll.u32 %s2215_s21, 4  ;;  %s2083_s9 = int_to_ptr.vmem [resolvable:$false] %s2082_s9 }
  0x44   : > { %s2084_s14 = scalar_lea.vmem %s2083_s9, 2560  ;;  %p2085_p8 = scmp.lt.s32.totalorder %s2381_s11, %s2083_s9 }
  0x45   : > { %p2080_p1 = pnand %p2078_p11, %p2034_p3  ;;  %p2086_p2 = scmp.lt.s32.totalorder %s2084_s14, %s2077_s24 }
  0x47   : > { %p2081_p6 = pneg %p2080_p1  ;;  %p2087_p5 = por %p2086_p2, %p2085_p8 }
  0x49   : > { %p2088_p4 = pnand %p2087_p5, %p2081_p6 }
  0x4b   : > { %2091 = shalt.err (!%p2088_p4)
}
  0x4c   : > { %s3579_s12 = smov 256   ;;  %241 = sbr.rel (%p2371_p12) target bundleno = 621 (0x26d), region = 32 }
  0x4d   : > { %1922 = dma.hbm_to_vmem [thread:$0]  (!%p2331_p0), %s2379_s8, 1280, %s2381_s11, %s217_s10, %s3579_s12, %s3579_s12, %s2214_s22  }
  0x53   : > { %s2415_s26 = sand.u32 1, %s2194_s16   ;;  %p3580_p8 = scmp.ne.s32.totalorder %s3573_s27, 0 }
  0x54   : > { %s1795_s6 = sshll.u32 %s2415_s26, 6  ;;  %s244_s7 = scalar_lea.sflag [#allocation3], %s2415_s26 }
  0x55   : > { %s247_s13 = scalar_lea.vmem [#allocation2], %s1795_s6 }
  0x56   : > { %2173 = dma.done.wait (%p3580_p8), %s244_s7, 1024  }
  0x57   : > { %2175 = vsyncadd (%p3580_p8), %s244_s7, 4294966272  ;;  %s2424_s5 = smul.u32 80, %s2415_s26  ;;  %s253_s22 = scalar_lea.sflag [#allocation6], %s2415_s26 }
  0x59   : > { %s2428_s25 = scalar_lea.vmem [#allocation5], %s2424_s5 }
  0x5a   : > { %2177 = dma.done.wait (%p3580_p8), %s253_s22, 1280  }
  0x5b   : > { %2179 = vsyncadd (%p3580_p8), %s253_s22, 4294966016  ;;  %v2216_v0 = vmov 0.0   ;;  %v296_v1 = vld [vmem:[%s247_s13 + $0x8] sm:$0xff]  ;;  %v298_v2 = vld [vmem:[%s247_s13 + $0x18] sm:$0xff]  ;;  %vm313_vm0 = vcmask 261120   ;;  %s3248_s14 = scalar_lea.vmem [#allocation8], %s2424_s5 }
  0x5c   : > { %408 = vmatprep.mubr.f32.mxu0 %v2216_v0  ;;  %438 = vmatprep.mubr.f32.mxu1 %v2216_v0  ;;  %v295_v3 = vld [vmem:[%s247_s13] sm:$0xff]  ;;  %v1851_v4 = vpack.c.bf16 %v298_v2, %v296_v1  ;;  %v297_v5 = vld [vmem:[%s247_s13 + $0x10] sm:$0xff]  ;;  %v300_v6 = vld [vmem:[%s247_s13 + $0x28] sm:$0xff]  ;;  %v3551_v56 = vmov 683565275   ;;  %s3259_s12 = scalar_lea.vmem [#allocation7], %s2424_s5 }
  0x5d   : > { %v302_v7 = vld [vmem:[%s247_s13 + $0x38] sm:$0xff]  ;;  %v1853_v8 = vpack.c.bf16 %v297_v5, %v295_v3  ;;  %v299_v10 = vld [vmem:[%s247_s13 + $0x20] sm:$0xff]  ;;  %v301_v11 = vld [vmem:[%s247_s13 + $0x30] sm:$0xff]  ;;  %v3545_v61 = vmov 2475754826   ;;  %s1906_s5 = smul.u32 1280, %s2202_s18 }
  0x5e   : > { %v1855_v9 = vpack.c.bf16 %v302_v7, %v300_v6  ;;  %1852 = vmatprep.subr.bf16.mxu0 %v1851_v4  ;;  %1859 = vmatprep.subr.bf16.mxu1 %v1851_v4  ;;  %v1857_v12 = vpack.c.bf16 %v301_v11, %v299_v10  ;;  %v303_v13 = vld [vmem:[%s3536_s0] sm:$0xff]  ;;  %v308_v14 = vld [vmem:[%s3536_s0 + $0x28] sm:$0xff]  ;;  %v309_v16 = vld [vmem:[%s3536_s0 + $0x30] sm:$0xff]  ;;  %v3549_v63 = vmov 2131351028   ;;  %s1638_s6 = sshll.u32 %s3248_s14, 4  ;;  %s3440_s6 = int_to_ptr.vmem [resolvable:$true] %s1638_s6 }
  0x5f   : > { %1854 = vmatpush1.bf16.msra.mxu0 %v1853_v8  ;;  %1861 = vmatpush1.bf16.msra.mxu1 %v1853_v8  ;;  %v304_v15 = vld [vmem:[%s3536_s0 + $0x8] sm:$0xff]  ;;  %v305_v17 = vld [vmem:[%s3536_s0 + $0x10] sm:$0xff]  ;;  %v310_v18 = vld [vmem:[%s3536_s0 + $0x38] sm:$0xff]  ;;  %v3547_v1 = vmov 2102212464   ;;  %s3438_s13 = scalar_lea.hbm %s3540_s4, %s1906_s5  ;;  %s1605_s22 = scalar_lea.sflag [#allocation9], %s2415_s26 }
  0x60   : > { %1856 = vmatprep.subr.bf16.mxu0 %v1855_v9  ;;  %1860 = vmatprep.subr.bf16.mxu1 %v1855_v9  ;;  %v306_v19 = vld [vmem:[%s3536_s0 + $0x18] sm:$0xff]  ;;  %v311_v20 = vld [vmem:[%s3536_s0 + $0x40] sm:$0xff]  ;;  %v312_v22 = vld [vmem:[%s3536_s0 + $0x48] sm:$0xff]  ;;  %v3558_v3 = vmov 920167782   ;;  %s2092_s27 = scalar_lea.vmem %s3440_s6, 1280 }
  0x61   : > { %v307_v21 = vld [vmem:[%s3536_s0 + $0x20] sm:$0xff]  ;;  %v3556_v10 = vmov 1326507024   ;;  %p2093_p0 = scmp.ne.s32.totalorder %s3440_s6, %s2092_s27  ;;  %p3644_p3 = scmp.ne.s32.totalorder %s3574_s28, 0 }
  0x62   : > { %s2224_s8 = smov [#allocation8]  }
  0x63   : > { %1858 = vmatpush1.bf16.msra.mxu0 %v1857_v12  ;;  %1862 = vmatpush1.bf16.msra.mxu1 %v1857_v12  ;;  %p2094_p12 = pnand %p2093_p0, %p3644_p3  ;;  %s2096_s11 = sshll.u32 %s2224_s8, 4  ;;  %s2097_s11 = int_to_ptr.vmem [resolvable:$false] %s2096_s11 }
  0x64   : > { %s2098_s10 = scalar_lea.vmem %s2097_s11, 2560  ;;  %p2099_p7 = scmp.lt.s32.totalorder %s3440_s6, %s2097_s11 }
  0x65   : > { %p2095_p13 = pneg %p2094_p12  ;;  %p2100_p10 = scmp.lt.s32.totalorder %s2098_s10, %s2092_s27 }
  0x66   : > { %1796 = vmatmul.mubr.msk.f32.vlgmr.msra.gmra.mrb[0].mxu0 %vm313_vm0, %v303_v13  ;;  %1801 = vmatmul.mubr.msk.f32.vlgmr.msra.gmra.mrb[0].mxu1 %vm313_vm0, %v308_v14 }
  0x67   : > { %414 = vmatprep.mubr.f32.mxu0 %v2216_v0  ;;  %444 = vmatprep.mubr.f32.mxu1 %v2216_v0  ;;  %p2101_p9 = por %p2100_p10, %p2099_p7 }
  0x69   : > { %p2102_p11 = pnand %p2101_p9, %p2095_p13 }
  0x6a   : > { %1797 = vmatmul.mubr.msk.f32.gmra.mrb[2].mxu0 %vm313_vm0, %v304_v15  ;;  %1802 = vmatmul.mubr.msk.f32.gmra.mrb[2].mxu1 %vm313_vm0, %v309_v16 }
  0x6b   : > { %420 = vmatprep.mubr.f32.mxu0 %v2216_v0  ;;  %450 = vmatprep.mubr.f32.mxu1 %v2216_v0 }
  0x6e   : > { %1798 = vmatmul.mubr.msk.f32.gmra.mrb[4].mxu0 %vm313_vm0, %v305_v17  ;;  %1803 = vmatmul.mubr.msk.f32.gmra.mrb[4].mxu1 %vm313_vm0, %v310_v18 }
  0x6f   : > { %426 = vmatprep.mubr.f32.mxu0 %v2216_v0  ;;  %456 = vmatprep.mubr.f32.mxu1 %v2216_v0 }
  0x72   : > { %1799 = vmatmul.mubr.msk.f32.gmra.mrb[6].mxu0 %vm313_vm0, %v306_v19  ;;  %1804 = vmatmul.mubr.msk.f32.gmra.mrb[6].mxu1 %vm313_vm0, %v311_v20 }
  0x73   : > { %432 = vmatprep.mubr.f32.mxu0 %v2216_v0  ;;  %462 = vmatprep.mubr.f32.mxu1 %v2216_v0 }
  0x76   : > { %1800 = vmatmul.mubr.msk.f32.gmra.mrb[8].mxu0 %vm313_vm0, %v307_v21  ;;  %1805 = vmatmul.mubr.msk.f32.gmra.mrb[8].mxu1 %vm313_vm0, %v312_v22 }
 0x139   : > { %v2474_v23 = vpop.f32.mrb[0].mxu0 }
 0x13a   : > { %v469_v24 = vand.u32 2147483647, %v2474_v23  ;;  %v472_v25 = vand.u32 2139095040, %v2474_v23  ;;  %v2478_v26 = vpop.f32.mrb[1].mxu0 }
 0x13b   : > { %v573_v27 = vand.u32 2147483647, %v2478_v26  ;;  %v576_v28 = vand.u32 2139095040, %v2478_v26 }
 0x13c   : > { %v473_v29 = vshrl.u32 %v472_v25, 23  ;;  %v476_v30 = vand.u32 8388607, %v469_v24 }
 0x13d   : > { %v577_v31 = vshrl.u32 %v576_v28, 23  ;;  %v580_v32 = vand.u32 8388607, %v573_v27  ;;  %v2486_v33 = vpop.f32.mrb[2].mxu0 }
 0x13e   : > { %v1806_v34 = vadd.s32 4294967169, %v473_v29  ;;  %v2488_v35 = vpop.f32.mrb[3].mxu0  ;;  %v680_v37 = vand.u32 2139095040, %v2486_v33  ;;  %v477_v39 = vor.u32 8388608, %v476_v30  ;;  %v677_v53 = vand.u32 2147483647, %v2486_v33 }
 0x13f   : > { %v1810_v36 = vadd.s32 4294967169, %v577_v31  ;;  %v581_v40 = vor.u32 8388608, %v580_v32 }
 0x140   : > { %v479_v38 = vadd.s32 1, %v1806_v34  ;;  %v681_v42 = vshrl.u32 %v680_v37, 23  ;;  %v2495_v50 = vshll.u32 %v477_v39, 8 }
 0x141   : > { %v583_v41 = vadd.s32 1, %v1810_v36  ;;  %v2491_v43 = vpop.f32.mrb[4].mxu0  ;;  %v2499_v52 = vshll.u32 %v581_v40, 8 }
 0x142   : > { %3581 = vst [vmem:[#allocation14_spill] sm:$0xff] %v2491_v43  ;;  %vm480_vm1 = vcmp.gt.s32.totalorder %v479_v38, 0  ;;  %v2493_v44 = vpop.f32.mrb[5].mxu0  ;;  %v1814_v46 = vadd.s32 4294967169, %v681_v42 }
 0x143   : > { %v481_v45 = vsel %vm480_vm1, %v479_v38, 0  ;;  %vm584_vm2 = vcmp.gt.s32.totalorder %v583_v41, 0  ;;  %vm471_vm1 = vcmp.lt.s32.totalorder %v2474_v23, 0 }
 0x144   : > { %v482_v47 = vshrl.u32 %v481_v45, 5  ;;  %v483_v48 = vand.u32 31, %v481_v45  ;;  %v585_v49 = vsel %vm584_vm2, %v583_v41, 0  ;;  %v2505_v59 = vadd.s32 1, %v1814_v46 }
 0x145   : > { %v2497_v51 = vshrl.u32 %v585_v49, 5  ;;  %v2502_v54 = vpop.f32.mrb[6].mxu0  ;;  %v587_v58 = vand.u32 31, %v585_v49 }
 0x146   : > { %3582 = vst [vmem:[#allocation15_spill] sm:$0xff] %v2502_v54  ;;  %v484_v55 = vsub.s32 32, %v483_v48  ;;  %v486_v57 = vshll.u32 %v3551_v56, %v483_v48  ;;  %v2507_v60 = vpop.f32.mrb[7].mxu0  ;;  %v489_v62 = vshll.u32 %v3545_v61, %v483_v48  ;;  %v492_v0 = vshll.u32 %v3549_v63, %v483_v48 }
 0x147   : > { %v495_v2 = vshll.u32 %v3547_v1, %v483_v48  ;;  %v498_v4 = vshll.u32 %v3558_v3, %v483_v48  ;;  %vm501_vm3 = vcmp.lt.s32.totalorder %v482_v47, 1  ;;  %vm502_vm4 = vcmp.lt.s32.totalorder %v482_v47, 2 }
 0x148   : > { %v487_v5 = vshrl.u32 %v3545_v61, %v484_v55  ;;  %v490_v6 = vshrl.u32 %v3549_v63, %v484_v55  ;;  %v493_v7 = vshrl.u32 %v3547_v1, %v484_v55  ;;  %v485_v8 = vshrl.u32 %v3551_v56, %v484_v55 }
 0x149   : > { %v496_v9 = vshrl.u32 %v3558_v3, %v484_v55  ;;  %v499_v11 = vshrl.u32 %v3556_v10, %v484_v55  ;;  %v588_v15 = vsub.s32 32, %v587_v58  ;;  %vm503_vm5 = vcmp.lt.s32.totalorder %v482_v47, 3  ;;  %v2525_v36 = vpop.f32.mrb[8].mxu0 }
 0x14a   : > { %v488_v12 = vor.u32 %v487_v5, %v486_v57  ;;  %v491_v13 = vor.u32 %v490_v6, %v489_v62  ;;  %v494_v14 = vor.u32 %v493_v7, %v492_v0  ;;  %vm504_vm6 = vcmp.lt.s32.totalorder %v482_v47, 4 }
 0x14b   : > { %v497_v16 = vor.u32 %v496_v9, %v495_v2  ;;  %v500_v17 = vor.u32 %v499_v11, %v498_v4  ;;  %v590_v29 = vshll.u32 %v3551_v56, %v587_v58  ;;  %v591_v32 = vshrl.u32 %v3545_v61, %v588_v15 }
 0x14c   : > { %v505_v18 = vsel %vm501_vm3, %v485_v8, %v488_v12  ;;  %v506_v19 = vsel %vm504_vm6, %v494_v14, 2102212464  ;;  %v509_v20 = vsel %vm501_vm3, %v488_v12, %v491_v13  ;;  %v513_v21 = vsel %vm501_vm3, %v491_v13, %v494_v14 }
 0x14d   : > { %v507_v22 = vsel %vm503_vm5, %v491_v13, %v506_v19  ;;  %v510_v25 = vsel %vm504_vm6, %v497_v16, 920167782  ;;  %v514_v28 = vsel %vm504_vm6, %v500_v17, 1326507024  ;;  %v593_v34 = vshll.u32 %v3545_v61, %v587_v58 }
 0x14e   : > { %v511_v30 = vsel %vm503_vm5, %v494_v14, %v510_v25  ;;  %v515_v31 = vsel %vm503_vm5, %v497_v16, %v514_v28  ;;  %v508_v37 = vsel %vm502_vm4, %v505_v18, %v507_v22  ;;  %v594_v40 = vshrl.u32 %v3549_v63, %v588_v15 }
 0x14f   : > { %v512_v38 = vsel %vm502_vm4, %v509_v20, %v511_v30  ;;  %v516_v39 = vsel %vm502_vm4, %v513_v21, %v515_v31  ;;  %v592_v48 = vor.u32 %v591_v32, %v590_v29  ;;  %v596_v55 = vshll.u32 %v3549_v63, %v587_v58 }
 0x150   : > { %v2532_v41 = vmul.u32.u64.low %v2495_v50, %v516_v39  ;;  %v2533_v42 = vmul.u32.u64.high %v2495_v50, %v516_v39, %v2532_v41  ;;  %v2536_v45 = vmul.u32.u64.low %v2495_v50, %v512_v38  ;;  %v2537_v46 = vmul.u32.u64.high %v2495_v50, %v512_v38, %v2536_v45 }
 0x151   : > { %v595_v49 = vor.u32 %v594_v40, %v593_v34  ;;  %v597_v57 = vshrl.u32 %v3547_v1, %v588_v15  ;;  %v589_v47 = vshrl.u32 %v3551_v56, %v588_v15  ;;  %v599_v62 = vshll.u32 %v3547_v1, %v587_v58 }
 0x152   : > { %v600_v0 = vshrl.u32 %v3558_v3, %v588_v15  ;;  %v603_v2 = vshrl.u32 %v3556_v10, %v588_v15  ;;  %v524_v4 = vmul.u32 %v2495_v50, %v508_v37  ;;  %v602_v6 = vshll.u32 %v3558_v3, %v587_v58 }
 0x153   : > { %v598_v5 = vor.u32 %v597_v57, %v596_v55  ;;  %vm605_vm7 = vcmp.lt.s32.totalorder %v2497_v51, 1  ;;  %vm526_vm8 = vc.u32 %v2533_v42, %v2536_v45  ;;  %v527_v7 = vadd.s32 1, %v2537_v46  ;;  %v2587_v57 = vpop.f32.mrb[9].mxu0 }
 0x154   : > { %v601_v8 = vor.u32 %v600_v0, %v599_v62  ;;  %vm606_vm9 = vcmp.lt.s32.totalorder %v2497_v51, 2  ;;  %v604_v9 = vor.u32 %v603_v2, %v602_v6  ;;  %vm607_vm10 = vcmp.lt.s32.totalorder %v2497_v51, 3 }
 0x155   : > { %vm608_vm11 = vcmp.lt.s32.totalorder %v2497_v51, 4  ;;  %v613_v11 = vsel %vm605_vm7, %v592_v48, %v595_v49  ;;  %v528_v50 = vsel %vm526_vm8, %v527_v7, %v2537_v46  ;;  %v617_v13 = vsel %vm605_vm7, %v595_v49, %v598_v5 }
 0x156   : > { %v610_v12 = vsel %vm608_vm11, %v598_v5, 2102212464  ;;  %v614_v58 = vsel %vm608_vm11, %v601_v8, 920167782  ;;  %v529_v14 = vadd.s32 %v528_v50, %v524_v4  ;;  %v609_v15 = vsel %vm605_vm7, %v589_v47, %v592_v48 }
 0x157   : > { %v615_v16 = vsel %vm607_vm10, %v598_v5, %v614_v58  ;;  %v618_v17 = vsel %vm608_vm11, %v604_v9, 1326507024  ;;  %v611_v18 = vsel %vm607_vm10, %v595_v49, %v610_v12  ;;  %vm688_vm12 = vcmp.gt.s32.totalorder %v2505_v59, 0 }
 0x158   : > { %v616_v19 = vsel %vm606_vm9, %v613_v11, %v615_v16  ;;  %v619_v20 = vsel %vm607_vm10, %v601_v8, %v618_v17  ;;  %v530_v21 = vadd.s32 536870912, %v529_v14  ;;  %v689_v31 = vsel %vm688_vm12, %v2505_v59, 0 }
 0x159   : > { %v620_v22 = vsel %vm606_vm9, %v617_v13, %v619_v20  ;;  %v2562_v25 = vmul.u32.u64.low %v2499_v52, %v616_v19  ;;  %v2563_v28 = vmul.u32.u64.high %v2499_v52, %v616_v19, %v2562_v25  ;;  %v612_v34 = vsel %vm606_vm9, %v609_v15, %v611_v18 }
 0x15a   : > { %v2567_v29 = vmul.u32.u64.low %v2499_v52, %v620_v22  ;;  %v2568_v30 = vmul.u32.u64.high %v2499_v52, %v620_v22, %v2567_v29  ;;  %v2571_v32 = vshrl.u32 %v530_v21, 30  ;;  %v684_v37 = vand.u32 8388607, %v677_v53 }
 0x15b   : > { %v691_v38 = vand.u32 31, %v689_v31  ;;  %v631_v40 = vadd.s32 1, %v2563_v28  ;;  %v781_v46 = vand.u32 2147483647, %v2488_v35  ;;  %v628_v48 = vmul.u32 %v2499_v52, %v612_v34 }
 0x15c   : > { %v532_v39 = vshll.u32 %v2571_v32, 30  ;;  %vm630_vm13 = vc.u32 %v2568_v30, %v2562_v25  ;;  %v685_v49 = vor.u32 8388608, %v684_v37  ;;  %v784_v55 = vand.u32 2139095040, %v2488_v35 }
 0x15d   : > { %v692_v41 = vsub.s32 32, %v691_v38  ;;  %v632_v51 = vsel %vm630_vm13, %v631_v40, %v2563_v28  ;;  %v694_v62 = vshll.u32 %v3551_v56, %v691_v38  ;;  %v697_v4 = vshll.u32 %v3545_v61, %v691_v38 }
 0x15e   : > { %v2583_v59 = vsub.s32 %v529_v14, %v532_v39  ;;  %v633_v47 = vadd.s32 %v632_v51, %v628_v48  ;;  %v2597_v6 = vand.u32 8388607, %v781_v46  ;;  %v690_v8 = vshrl.u32 %v689_v31, 5 }
 0x15f   : > { %v695_v0 = vshrl.u32 %v3545_v61, %v692_v41  ;;  %v698_v2 = vshrl.u32 %v3549_v63, %v692_v41  ;;  %v701_v5 = vshrl.u32 %v3547_v1, %v692_v41  ;;  %v700_v11 = vshll.u32 %v3549_v63, %v691_v38 }
 0x160   : > { %v535_v52 = vsub.s32 0, %v2583_v59  ;;  %v634_v7 = vadd.s32 536870912, %v633_v47  ;;  %v703_v58 = vshll.u32 %v3547_v1, %v691_v38  ;;  %v704_v13 = vshrl.u32 %v3558_v3, %v692_v41 }
 0x161   : > { %v696_v9 = vor.u32 %v695_v0, %v694_v62  ;;  %v699_v12 = vor.u32 %v698_v2, %v697_v4  ;;  %v702_v15 = vor.u32 %v701_v5, %v700_v11  ;;  %v707_v16 = vshrl.u32 %v3556_v10, %v692_v41 }
 0x162   : > { %v1807_v50 = vmin.u32 %v535_v52, %v2583_v59  ;;  %v2603_v14 = vshrl.u32 %v634_v7, 30  ;;  %v785_v17 = vshrl.u32 %v784_v55, 23  ;;  %v693_v19 = vshrl.u32 %v3551_v56, %v692_v41 }
 0x163   : > { %v705_v20 = vor.u32 %v704_v13, %v703_v58  ;;  %v706_v21 = vshll.u32 %v3558_v3, %v691_v38  ;;  %vm709_vm14 = vcmp.lt.s32.totalorder %v690_v8, 1  ;;  %vm711_vm15 = vcmp.lt.s32.totalorder %v690_v8, 3 }
 0x164   : > { %v537_v18 = vclz %v1807_v50  ;;  %v636_v22 = vshll.u32 %v2603_v14, 30  ;;  %vm712_vm0 = vcmp.lt.s32.totalorder %v690_v8, 4  ;;  %v717_v31 = vsel %vm709_vm14, %v696_v9, %v699_v12 }
 0x165   : > { %v708_v29 = vor.u32 %v707_v16, %v706_v21  ;;  %v718_v34 = vsel %vm712_vm0, %v705_v20, 920167782  ;;  %vm710_vm2 = vcmp.lt.s32.totalorder %v690_v8, 2  ;;  %v714_v39 = vsel %vm712_vm0, %v702_v15, 2102212464 }
 0x166   : > { %v1808_v28 = vadd.s32 4294967294, %v537_v18  ;;  %v2612_v37 = vsub.s32 %v633_v47, %v636_v22  ;;  %v719_v38 = vsel %vm711_vm15, %v702_v15, %v718_v34  ;;  %v725_v41 = vshll.u32 %v685_v49, 8 }
 0x167   : > { %v720_v40 = vsel %vm710_vm2, %v717_v31, %v719_v38  ;;  %v1818_v48 = vadd.s32 4294967169, %v785_v17  ;;  %v713_v62 = vsel %vm709_vm14, %v693_v19, %v696_v9  ;;  %v721_v0 = vsel %vm709_vm14, %v699_v12, %v702_v15 }
 0x168   : > { %vm1809_vm3 = vcmp.lt.s32.totalorder %v1808_v28, 0  ;;  %v639_v55 = vsub.s32 0, %v2612_v37  ;;  %v715_v52 = vsel %vm711_vm15, %v699_v12, %v714_v39  ;;  %v722_v4 = vsel %vm712_vm0, %v708_v29, 1326507024 }
 0x169   : > { %v540_v51 = vsel %vm1809_vm3, 0, %v1808_v28  ;;  %v723_v7 = vsel %vm711_vm15, %v705_v20, %v722_v4  ;;  %v2624_v11 = vmul.u32.u64.low %v725_v41, %v720_v40  ;;  %v2625_v49 = vmul.u32.u64.high %v725_v41, %v720_v40, %v2624_v11 }
 0x16a   : > { %v541_v2 = vsub.s32 32, %v540_v51  ;;  %v545_v47 = vsub.s32 4294967266, %v540_v51  ;;  %v1811_v5 = vmin.u32 %v639_v55, %v2612_v37  ;;  %v525_v50 = vadd.s32 %v2536_v45, %v2533_v42 }
 0x16b   : > { %v555_v58 = vsub.s32 4, %v2571_v32  ;;  %v724_v13 = vsel %vm710_vm2, %v721_v0, %v723_v7  ;;  %v791_v17 = vadd.s32 1, %v1818_v48  ;;  %vm2637_vm4 = vcmp.le.f32.partialorder %v469_v24, 0.7853982 }
 0x16c   : > { %v546_v9 = vadd.s32 127, %v545_v47  ;;  %v641_v15 = vclz %v1811_v5  ;;  %v2632_v12 = vmul.u32.u64.low %v725_v41, %v724_v13  ;;  %v2633_v16 = vmul.u32.u64.high %v725_v41, %v724_v13, %v2632_v12 }
 0x16d   : > { %v543_v19 = vshrl.u32 %v525_v50, %v541_v2  ;;  %v716_v42 = vsel %vm710_vm2, %v713_v62, %v715_v52  ;;  %vm575_vm5 = vcmp.lt.s32.totalorder %v2478_v26, 0  ;;  %v735_v21 = vadd.s32 1, %v2625_v49 }
 0x16e   : > { %v547_v20 = vshll.u32 %v546_v9, 23  ;;  %v1812_v45 = vadd.s32 4294967294, %v641_v15  ;;  %v789_v22 = vor.u32 8388608, %v2597_v6  ;;  %vm792_vm6 = vcmp.gt.s32.totalorder %v791_v17, 0 }
 0x16f   : > { %v542_v28 = vshll.u32 %v2583_v59, %v540_v51  ;;  %v556_v24 = vsel %vm471_vm1, %v555_v58, %v2571_v32  ;;  %v793_v31 = vsel %vm792_vm6, %v791_v17, 0  ;;  %v629_v8 = vadd.s32 %v2562_v25, %v2568_v30 }
 0x170   : > { %v548_v29 = vor.u32 4788187, %v547_v20  ;;  %vm1813_vm7 = vcmp.lt.s32.totalorder %v1812_v45, 0  ;;  %v732_v34 = vmul.u32 %v725_v41, %v716_v42  ;;  %vm734_vm8 = vc.u32 %v2633_v16, %v2624_v11 }
 0x171   : > { %v544_v39 = vor.u32 %v543_v19, %v542_v28  ;;  %v644_v38 = vsel %vm1813_vm7, 0, %v1812_v45  ;;  %v736_v6 = vsel %vm734_vm8, %v735_v21, %v2625_v49  ;;  %v795_v40 = vand.u32 31, %v793_v31 }
 0x172   : > { %v558_v59 = vsel %vm2637_vm4, 0, %v556_v24  ;;  %v645_v48 = vsub.s32 32, %v644_v38  ;;  %v649_v51 = vsub.s32 4294967266, %v644_v38  ;;  %v737_v32 = vadd.s32 %v736_v6, %v732_v34 }
 0x173   : > { %v549_v55 = vand.u32 2147483647, %v548_v29  ;;  %vm2658_vm9 = vcmp.le.f32.partialorder %v573_v27, 0.7853982  ;;  %v659_v30 = vsub.s32 4, %v2603_v14  ;;  %v796_v41 = vsub.s32 32, %v795_v40 }
 0x174   : > { %v885_v62 = vand.u32 2147483647, %v2491_v43  ;;  %v646_v0 = vshll.u32 %v2612_v37, %v644_v38  ;;  %v647_v2 = vshrl.u32 %v629_v8, %v645_v48  ;;  %v650_v47 = vadd.s32 127, %v649_v51 }
 0x175   : > { %v738_v52 = vadd.s32 536870912, %v737_v32  ;;  %v551_v4 = vcvt.s32.f32 %v544_v39  ;;  %v2665_v5 = vadd.s32 3, %v558_v59  ;;  %v799_v7 = vshrl.u32 %v3545_v61, %v796_v41 }
 0x176   : > { %v888_v27 = vand.u32 2139095040, %v2491_v43  ;;  %v648_v49 = vor.u32 %v647_v2, %v646_v0  ;;  %v651_v50 = vshll.u32 %v650_v47, 23  ;;  %v802_v58 = vshrl.u32 %v3549_v63, %v796_v41 }
 0x177   : > { %v739_v9 = vshrl.u32 %v738_v52, 30  ;;  %v2673_v13 = vsel %vm575_vm5, %v659_v30, %v2603_v14  ;;  %v794_v37 = vshrl.u32 %v793_v31, 5  ;;  %v798_v15 = vshll.u32 %v3551_v56, %v795_v40 }
 0x178   : > { %v805_v12 = vshrl.u32 %v3547_v1, %v796_v41  ;;  %v552_v17 = vmul.f32 %v551_v4, %v549_v55  ;;  %v652_v19 = vor.u32 4788187, %v651_v50  ;;  %v801_v42 = vshll.u32 %v3545_v61, %v795_v40 }
 0x179   : > { %v740_v20 = vshll.u32 %v739_v9, 30  ;;  %v800_v45 = vor.u32 %v799_v7, %v798_v15  ;;  %v804_v21 = vshll.u32 %v3549_v63, %v795_v40  ;;  %v807_v28 = vshll.u32 %v3547_v1, %v795_v40 }
 0x17a   : > { %v808_v29 = vshrl.u32 %v3558_v3, %v796_v41  ;;  %v653_v24 = vand.u32 2147483647, %v652_v19  ;;  %v655_v14 = vcvt.s32.f32 %v648_v49  ;;  %v803_v31 = vor.u32 %v802_v58, %v801_v42 }
 0x17b   : > { %v2681_v8 = vsub.s32 %v737_v32, %v740_v20  ;;  %vm679_vm10 = vcmp.lt.s32.totalorder %v2486_v33, 0  ;;  %v806_v34 = vor.u32 %v805_v12, %v804_v21  ;;  %v810_v38 = vshll.u32 %v3558_v3, %v795_v40 }
 0x17c   : > { %v809_v39 = vor.u32 %v808_v29, %v807_v28  ;;  %v811_v6 = vshrl.u32 %v3556_v10, %v796_v41  ;;  %v662_v59 = vsel %vm2658_vm9, 0, %v2673_v13  ;;  %v829_v51 = vshll.u32 %v789_v22, 8 }
 0x17d   : > { %v743_v48 = vsub.s32 0, %v2681_v8  ;;  %v889_v55 = vshrl.u32 %v888_v27, 23  ;;  %v553_v30 = vxor.u32 2147483648, %v552_v17  ;;  %v656_v32 = vmul.f32 %v655_v14, %v653_v24 }
 0x17e   : > { %v797_v0 = vshrl.u32 %v3551_v56, %v796_v41  ;;  %v812_v2 = vor.u32 %v811_v6, %v810_v38  ;;  %vm2693_vm11 = vcmp.le.f32.partialorder %v677_v53, 0.7853982  ;;  %v763_v52 = vsub.s32 4, %v739_v9 }
 0x17f   : > { %v1815_v40 = vmin.u32 %v743_v48, %v2681_v8  ;;  %vm813_vm12 = vcmp.lt.s32.totalorder %v794_v37, 1  ;;  %vm816_vm13 = vcmp.lt.s32.totalorder %v794_v37, 4  ;;  %vm815_vm14 = vcmp.lt.s32.totalorder %v794_v37, 3 }
 0x180   : > { %v818_v4 = vsel %vm816_vm13, %v806_v34, 2102212464  ;;  %v821_v22 = vsel %vm813_vm12, %v800_v45, %v803_v31  ;;  %v822_v7 = vsel %vm816_vm13, %v809_v39, 920167782  ;;  %vm814_vm15 = vcmp.lt.s32.totalorder %v794_v37, 2 }
 0x181   : > { %v745_v27 = vclz %v1815_v40  ;;  %v823_v49 = vsel %vm815_vm14, %v806_v34, %v822_v7  ;;  %v825_v41 = vsel %vm813_vm12, %v803_v31, %v806_v34  ;;  %v657_v50 = vxor.u32 2147483648, %v656_v32 }
 0x182   : > { %v817_v58 = vsel %vm813_vm12, %v797_v0, %v800_v45  ;;  %v824_v53 = vsel %vm814_vm15, %v821_v22, %v823_v49  ;;  %v826_v13 = vsel %vm816_vm13, %v812_v2, 1326507024  ;;  %v819_v12 = vsel %vm815_vm14, %v803_v31, %v818_v4 }
 0x183   : > { %v1816_v15 = vadd.s32 4294967294, %v745_v27  ;;  %v827_v19 = vsel %vm815_vm14, %v809_v39, %v826_v13  ;;  %v1822_v20 = vadd.s32 4294967169, %v889_v55  ;;  %v554_v42 = vsel %vm471_vm1, %v553_v30, %v552_v17 }
 0x184   : > { %v828_v21 = vsel %vm814_vm15, %v825_v41, %v827_v19  ;;  %v2702_v28 = vmul.u32.u64.low %v829_v51, %v824_v53  ;;  %v2703_v29 = vmul.u32.u64.high %v829_v51, %v824_v53, %v2702_v28  ;;  %v764_v45 = vsel %vm679_vm10, %v763_v52, %v739_v9 }
 0x185   : > { %vm1817_vm0 = vcmp.lt.s32.totalorder %v1816_v15, 0  ;;  %v2708_v24 = vmul.u32.u64.low %v829_v51, %v828_v21  ;;  %v2709_v14 = vmul.u32.u64.high %v829_v51, %v828_v21, %v2708_v24  ;;  %v658_v31 = vsel %vm575_vm5, %v657_v50, %v656_v32 }
 0x186   : > { %v748_v34 = vsel %vm1817_vm0, 0, %v1816_v15  ;;  %v820_v39 = vsel %vm814_vm15, %v817_v58, %v819_v12  ;;  %v895_v17 = vadd.s32 1, %v1822_v20  ;;  %v733_v38 = vadd.s32 %v2624_v11, %v2633_v16 }
 0x187   : > { %v749_v6 = vsub.s32 32, %v748_v34  ;;  %v753_v48 = vsub.s32 4294967266, %v748_v34  ;;  %v892_v55 = vand.u32 8388607, %v885_v62  ;;  %v557_v9 = vsel %vm2637_vm4, %v2474_v23, %v554_v42 }
 0x188   : > { %v766_v30 = vsel %vm2693_vm11, 0, %v764_v45  ;;  %v839_v32 = vadd.s32 1, %v2703_v29  ;;  %vm896_vm1 = vcmp.gt.s32.totalorder %v895_v17, 0  ;;  %v661_v37 = vsel %vm2658_vm9, %v2478_v26, %v658_v31 }
 0x189   : > { %v754_v11 = vadd.s32 127, %v753_v48  ;;  %v836_v16 = vmul.u32 %v829_v51, %v820_v39  ;;  %vm838_vm2 = vc.u32 %v2709_v14, %v2702_v28  ;;  %v751_v0 = vshrl.u32 %v733_v38, %v749_v6 }
 0x18a   : > { %v840_v2 = vsel %vm838_vm2, %v839_v32, %v2703_v29  ;;  %v897_v18 = vsel %vm896_vm1, %v895_v17, 0  ;;  %v992_v40 = vand.u32 2139095040, %v2493_v44  ;;  %1992 = vcosq.f32 %v557_v9 }
 0x18b   : > { %v2731_v52 = vadd.s32 3, %v662_v59  ;;  %v755_v4 = vshll.u32 %v754_v11, 23  ;;  %v841_v22 = vadd.s32 %v840_v2, %v836_v16  ;;  %1994 = vsinq.f32 %v557_v9 }
 0x18c   : > { %v750_v25 = vshll.u32 %v2681_v8, %v748_v34  ;;  %v2734_v7 = vadd.s32 3, %v766_v30  ;;  %v899_v51 = vand.u32 31, %v897_v18  ;;  %1996 = vcosq.f32 %v661_v37 }
 0x18d   : > { %v756_v27 = vor.u32 4788187, %v755_v4  ;;  %v842_v49 = vadd.s32 536870912, %v841_v22  ;;  %v893_v41 = vor.u32 8388608, %v892_v55  ;;  %v989_v53 = vand.u32 2147483647, %v2493_v44 }
 0x18e   : > { %v752_v50 = vor.u32 %v751_v0, %v750_v25  ;;  %v900_v58 = vsub.s32 32, %v899_v51  ;;  %v993_v13 = vshrl.u32 %v992_v40, 23  ;;  %v2737_v59 = vshrl.u32 %v897_v18, 5 }
 0x18f   : > { %v843_v15 = vshrl.u32 %v842_v49, 30  ;;  %v902_v12 = vshll.u32 %v3551_v56, %v899_v51  ;;  %v905_v19 = vshll.u32 %v3545_v61, %v899_v51  ;;  %v908_v42 = vshll.u32 %v3549_v63, %v899_v51 }
 0x190   : > { %v903_v8 = vshrl.u32 %v3545_v61, %v900_v58  ;;  %v906_v20 = vshrl.u32 %v3549_v63, %v900_v58  ;;  %v909_v21 = vshrl.u32 %v3547_v1, %v900_v58  ;;  %v757_v29 = vand.u32 2147483647, %v756_v27 }
 0x191   : > { %v844_v45 = vshll.u32 %v843_v15, 30  ;;  %v911_v24 = vshll.u32 %v3547_v1, %v899_v51  ;;  %v912_v31 = vshrl.u32 %v3558_v3, %v900_v58  ;;  %v915_v38 = vshrl.u32 %v3556_v10, %v900_v58 }
 0x192   : > { %v904_v34 = vor.u32 %v903_v8, %v902_v12  ;;  %v907_v39 = vor.u32 %v906_v20, %v905_v19  ;;  %v910_v17 = vor.u32 %v909_v21, %v908_v42  ;;  %1998 = vsinq.f32 %v661_v37 }
 0x193   : > { %vm783_vm3 = vcmp.lt.s32.totalorder %v2488_v35, 0  ;;  %v2749_v6 = vsub.s32 %v841_v22, %v844_v45  ;;  %v913_v48 = vor.u32 %v912_v31, %v911_v24  ;;  %v914_v55 = vshll.u32 %v3558_v3, %v899_v51 }
 0x194   : > { %v759_v9 = vcvt.s32.f32 %v752_v50  ;;  %v933_v30 = vshll.u32 %v893_v41, 8  ;;  %v1826_v32 = vadd.s32 4294967169, %v993_v13  ;;  %v996_v11 = vand.u32 8388607, %v989_v53  ;;  %v2754_v16 = vpop.eup %1992 }
 0x195   : > { %v847_v0 = vsub.s32 0, %v2749_v6  ;;  %v916_v2 = vor.u32 %v915_v38, %v914_v55  ;;  %vm917_vm4 = vcmp.lt.s32.totalorder %v2737_v59, 1  ;;  %vm920_vm5 = vcmp.lt.s32.totalorder %v2737_v59, 4  ;;  %v2759_v37 = vpop.eup %1994 }
 0x196   : > { %v760_v18 = vmul.f32 %v759_v9, %v757_v29  ;;  %vm2763_vm6 = vcmp.le.f32.partialorder %v781_v46, 0.7853982  ;;  %v901_v4 = vshrl.u32 %v3551_v56, %v900_v58  ;;  %v922_v22 = vsel %vm920_vm5, %v910_v17, 2102212464  ;;  %v2772_v51 = vpop.eup %1996 }
 0x197   : > { %v925_v25 = vsel %vm917_vm4, %v904_v34, %v907_v39  ;;  %v1819_v27 = vmin.u32 %v847_v0, %v2749_v6  ;;  %v867_v49 = vsub.s32 4, %v843_v15  ;;  %vm919_vm7 = vcmp.lt.s32.totalorder %v2737_v59, 3 }
 0x198   : > { %v926_v46 = vsel %vm920_vm5, %v913_v48, 920167782  ;;  %vm918_vm8 = vcmp.lt.s32.totalorder %v2737_v59, 2  ;;  %v921_v41 = vsel %vm917_vm4, %v901_v4, %v904_v34  ;;  %v929_v58 = vsel %vm917_vm4, %v907_v39, %v910_v17 }
 0x199   : > { %v927_v50 = vsel %vm919_vm7, %v910_v17, %v926_v46  ;;  %v849_v13 = vclz %v1819_v27  ;;  %v923_v12 = vsel %vm919_vm7, %v907_v39, %v922_v22  ;;  %v930_v8 = vsel %vm920_vm5, %v916_v2, 1326507024 }
 0x19a   : > { %v928_v19 = vsel %vm918_vm8, %v925_v25, %v927_v50  ;;  %v931_v20 = vsel %vm919_vm7, %v913_v48, %v930_v8  ;;  %v999_v29 = vadd.s32 1, %v1826_v32  ;;  %v761_v45 = vxor.u32 2147483648, %v760_v18 }
 0x19b   : > { %v2787_v42 = vmul.u32.u64.low %v933_v30, %v928_v19  ;;  %v2788_v21 = vmul.u32.u64.high %v933_v30, %v928_v19, %v2787_v42  ;;  %v1820_v24 = vadd.s32 4294967294, %v849_v13  ;;  %v932_v31 = vsel %vm918_vm8, %v929_v58, %v931_v20 }
 0x19c   : > { %v997_v34 = vor.u32 8388608, %v996_v11  ;;  %v2795_v39 = vsel %vm783_vm3, %v867_v49, %v843_v15  ;;  %v2797_v17 = vmul.u32.u64.low %v933_v30, %v932_v31  ;;  %v2798_v38 = vmul.u32.u64.high %v933_v30, %v932_v31, %v2797_v17  ;;  %v2800_v48 = vpop.eup %1998 }
 0x19d   : > { %vm1000_vm9 = vcmp.gt.s32.totalorder %v999_v29, 0  ;;  %v837_v55 = vadd.s32 %v2702_v28, %v2709_v14  ;;  %vm1821_vm12 = vcmp.lt.s32.totalorder %v1820_v24, 0  ;;  %v924_v9 = vsel %vm918_vm8, %v921_v41, %v923_v12 }
 0x19e   : > { %v1001_v32 = vsel %vm1000_vm9, %v999_v29, 0  ;;  %v852_v0 = vsel %vm1821_vm12, 0, %v1820_v24  ;;  %v943_v11 = vadd.s32 1, %v2788_v21  ;;  %v3544_v15 = vand.u32 2147483647, %v2502_v54 }
 0x19f   : > { %v1003_v2 = vand.u32 31, %v1001_v32  ;;  %v2810_v4 = vsel %vm679_vm10, %v761_v45, %v760_v18  ;;  %v853_v22 = vsub.s32 32, %v852_v0  ;;  %v857_v25 = vsub.s32 4294967266, %v852_v0 }
 0x1a0   : > { %v870_v28 = vsel %vm2763_vm6, 0, %v2795_v39  ;;  %v940_v14 = vmul.u32 %v933_v30, %v924_v9  ;;  %vm942_vm13 = vc.u32 %v2798_v38, %v2787_v42  ;;  %v2817_v27 = vshll.u32 %v997_v34, 8 }
 0x1a1   : > { %v1004_v59 = vsub.s32 32, %v1003_v2  ;;  %v854_v49 = vshll.u32 %v2749_v6, %v852_v0  ;;  %v855_v46 = vshrl.u32 %v837_v55, %v853_v22  ;;  %v858_v41 = vadd.s32 127, %v857_v25 }
 0x1a2   : > { %v944_v18 = vsel %vm942_vm13, %v943_v11, %v2788_v21  ;;  %v1006_v58 = vshll.u32 %v3551_v56, %v1003_v2  ;;  %v1009_v8 = vshll.u32 %v3545_v61, %v1003_v2  ;;  %vm887_vm10 = vcmp.lt.s32.totalorder %v2491_v43, 0 }
 0x1a3   : > { %v945_v50 = vadd.s32 %v944_v18, %v940_v14  ;;  %v1007_v13 = vshrl.u32 %v3545_v61, %v1004_v59  ;;  %v1010_v12 = vshrl.u32 %v3549_v63, %v1004_v59  ;;  %v856_v30 = vor.u32 %v855_v46, %v854_v49 }
 0x1a4   : > { %v859_v19 = vshll.u32 %v858_v41, 23  ;;  %v1013_v20 = vshrl.u32 %v3547_v1, %v1004_v59  ;;  %v1002_v29 = vshrl.u32 %v1001_v32, 5  ;;  %v1012_v21 = vshll.u32 %v3549_v63, %v1003_v2 }
 0x1a5   : > { %v946_v6 = vadd.s32 536870912, %v945_v50  ;;  %v1008_v45 = vor.u32 %v1007_v13, %v1006_v58  ;;  %v1011_v31 = vor.u32 %v1010_v12, %v1009_v8  ;;  %v1015_v34 = vshll.u32 %v3547_v1, %v1003_v2 }
 0x1a6   : > { %v860_v24 = vor.u32 4788187, %v859_v19  ;;  %v1016_v17 = vshrl.u32 %v3558_v3, %v1004_v59  ;;  %v863_v55 = vcvt.s32.f32 %v856_v30  ;;  %v1019_v0 = vshrl.u32 %v3556_v10, %v1004_v59 }
 0x1a7   : > { %v947_v9 = vshrl.u32 %v946_v6, 30  ;;  %v1096_v11 = vand.u32 2139095040, %v2502_v54  ;;  %vm2834_vm14 = vcmp.le.f32.partialorder %v885_v62, 0.7853982  ;;  %v1014_v25 = vor.u32 %v1013_v20, %v1012_v21 }
 0x1a8   : > { %v861_v22 = vand.u32 2147483647, %v860_v24  ;;  %v1017_v14 = vor.u32 %v1016_v17, %v1015_v34  ;;  %v1018_v49 = vshll.u32 %v3558_v3, %v1003_v2  ;;  %vm1021_vm15 = vcmp.lt.s32.totalorder %v1002_v29, 1 }
 0x1a9   : > { %v948_v46 = vshll.u32 %v947_v9, 30  ;;  %v971_v41 = vsub.s32 4, %v947_v9  ;;  %v1100_v18 = vand.u32 8388607, %v3544_v15  ;;  %vm1024_vm0 = vcmp.lt.s32.totalorder %v1002_v29, 4 }
 0x1aa   : > { %v864_v58 = vmul.f32 %v863_v55, %v861_v22  ;;  %v1020_v13 = vor.u32 %v1019_v0, %v1018_v49  ;;  %v1029_v12 = vsel %vm1021_vm15, %v1008_v45, %v1011_v31  ;;  %vm1023_vm1 = vcmp.lt.s32.totalorder %v1002_v29, 3 }
 0x1ab   : > { %v2842_v30 = vsub.s32 %v945_v50, %v948_v46  ;;  %v1030_v62 = vsel %vm1024_vm0, %v1017_v14, 920167782  ;;  %v1097_v19 = vshrl.u32 %v1096_v11, 23  ;;  %vm1022_vm2 = vcmp.lt.s32.totalorder %v1002_v29, 2 }
 0x1ac   : > { %v865_v8 = vxor.u32 2147483648, %v864_v58  ;;  %v1026_v20 = vsel %vm1024_vm0, %v1014_v25, 2102212464  ;;  %v1031_v2 = vsel %vm1023_vm1, %v1014_v25, %v1030_v62  ;;  %v1005_v21 = vshrl.u32 %v3551_v56, %v1004_v59 }
 0x1ad   : > { %v951_v6 = vsub.s32 0, %v2842_v30  ;;  %v1032_v24 = vsel %vm1022_vm2, %v1029_v12, %v1031_v2  ;;  %v1033_v34 = vsel %vm1021_vm15, %v1011_v31, %v1014_v25  ;;  %v972_v50 = vsel %vm887_vm10, %v971_v41, %v947_v9 }
 0x1ae   : > { %v1034_v17 = vsel %vm1024_vm0, %v1020_v13, 1326507024  ;;  %v2852_v55 = vmul.u32.u64.low %v2817_v27, %v1032_v24  ;;  %v2853_v0 = vmul.u32.u64.high %v2817_v27, %v1032_v24, %v2852_v55  ;;  %v1025_v22 = vsel %vm1021_vm15, %v1005_v21, %v1008_v45 }
 0x1af   : > { %v1823_v11 = vmin.u32 %v951_v6, %v2842_v30  ;;  %v1027_v49 = vsel %vm1023_vm1, %v1011_v31, %v1026_v20  ;;  %v1035_v59 = vsel %vm1023_vm1, %v1017_v14, %v1034_v17  ;;  %v765_v25 = vsel %vm2693_vm11, %v2486_v33, %v2810_v4  ;;  %v2873_v14 = vpop.f32.mrb[0].mxu1 }
 0x1b0   : > { %v866_v9 = vsel %vm783_vm3, %v865_v8, %v864_v58  ;;  %v1036_v46 = vsel %vm1022_vm2, %v1033_v34, %v1035_v59  ;;  %v1830_v41 = vadd.s32 4294967169, %v1097_v19  ;;  %v974_v12 = vsel %vm2834_vm14, 0, %v972_v50  ;;  %v2883_v19 = vpop.f32.mrb[1].mxu1 }
 0x1b1   : > { %v953_v13 = vclz %v1823_v11  ;;  %v2870_v45 = vmul.u32.u64.low %v2817_v27, %v1036_v46  ;;  %v2871_v31 = vmul.u32.u64.high %v2817_v27, %v1036_v46, %v2870_v45  ;;  %v2879_v47 = vadd.s32 3, %v870_v28  ;;  %v2899_v24 = vpop.f32.mrb[2].mxu1 }
 0x1b2   : > { %v1028_v4 = vsel %vm1022_vm2, %v1025_v22, %v1027_v49  ;;  %v1047_v58 = vadd.s32 1, %v2853_v0  ;;  %v1103_v62 = vadd.s32 1, %v1830_v41  ;;  %2000 = vcosq.f32 %v765_v25  ;;  %v2903_v17 = vpop.f32.mrb[3].mxu1 }
 0x1b3   : > { %v2888_v8 = vsel %vm2763_vm6, %v2488_v35, %v866_v9  ;;  %v1824_v20 = vadd.s32 4294967294, %v953_v13  ;;  %v1101_v2 = vor.u32 8388608, %v1100_v18  ;;  %2002 = vsinq.f32 %v765_v25  ;;  %3594 = vst [vmem:[#allocation17_spill] sm:$0xff] %v2903_v17 }
 0x1b4   : > { %v941_v39 = vadd.s32 %v2787_v42, %v2798_v38  ;;  %v2892_v28 = vadd.s32 3, %v974_v12  ;;  %vm1104_vm11 = vcmp.gt.s32.totalorder %v1103_v62, 0  ;;  %v1044_v29 = vmul.u32 %v2817_v27, %v1028_v4 }
 0x1b5   : > { %vm1825_vm3 = vcmp.lt.s32.totalorder %v1824_v20, 0  ;;  %vm1046_vm4 = vc.u32 %v2871_v31, %v2852_v55  ;;  %v1105_v6 = vsel %vm1104_vm11, %v1103_v62, 0  ;;  %2004 = vcosq.f32 %v2888_v8 }
 0x1b6   : > { %3593 = vst [vmem:[#allocation16_spill] sm:$0xff] %v2892_v28  ;;  %v956_v40 = vsel %vm1825_vm3, 0, %v1824_v20  ;;  %v1048_v21 = vsel %vm1046_vm4, %v1047_v58, %v2853_v0  ;;  %v1107_v18 = vand.u32 31, %v1105_v6  ;;  %v2901_v50 = vshll.u32 %v1101_v2, 8  ;;  %v2909_v0 = vpop.f32.mrb[4].mxu1 }
 0x1b7   : > { %v957_v34 = vsub.s32 32, %v956_v40  ;;  %v961_v42 = vsub.s32 4294967266, %v956_v40  ;;  %v1049_v38 = vadd.s32 %v1048_v21, %v1044_v29  ;;  %v958_v27 = vshll.u32 %v2842_v30, %v956_v40  ;;  %3595 = vst [vmem:[#allocation18_spill] sm:$0xff] %v2909_v0  ;;  %v2912_v41 = vpop.f32.mrb[5].mxu1 }
 0x1b8   : > { %vm991_vm5 = vcmp.lt.s32.totalorder %v2493_v44, 0  ;;  %v1108_v11 = vsub.s32 32, %v1107_v18  ;;  %v1200_v49 = vand.u32 2139095040, %v2507_v60  ;;  %v1110_v46 = vshll.u32 %v3551_v56, %v1107_v18  ;;  %3596 = vst [vmem:[#allocation19_spill] sm:$0xff] %v2912_v41  ;;  %v2918_v4 = vpop.f32.mrb[6].mxu1 }
 0x1b9   : > { %v959_v59 = vshrl.u32 %v941_v39, %v957_v34  ;;  %v962_v25 = vadd.s32 127, %v961_v42  ;;  %v1050_v9 = vadd.s32 536870912, %v1049_v38  ;;  %v1113_v30 = vshll.u32 %v3545_v61, %v1107_v18  ;;  %3597 = vst [vmem:[#allocation20_spill] sm:$0xff] %v2918_v4  ;;  %v2921_v39 = vpop.f32.mrb[7].mxu1 }
 0x1ba   : > { %v1111_v13 = vshrl.u32 %v3545_v61, %v1108_v11  ;;  %v1114_v12 = vshrl.u32 %v3549_v63, %v1108_v11  ;;  %v1117_v45 = vshrl.u32 %v3547_v1, %v1108_v11  ;;  %v1120_v2 = vshrl.u32 %v3558_v3, %v1108_v11  ;;  %3598 = vst [vmem:[#allocation21_spill] sm:$0xff] %v2921_v39 }
 0x1bb   : > { %v960_v58 = vor.u32 %v959_v59, %v958_v27  ;;  %v963_v62 = vshll.u32 %v962_v25, 23  ;;  %v1051_v20 = vshrl.u32 %v1050_v9, 30  ;;  %v1106_v29 = vshrl.u32 %v1105_v6, 5  ;;  %v2933_v9 = vpop.f32.mrb[8].mxu1 }
 0x1bc   : > { %v1112_v40 = vor.u32 %v1111_v13, %v1110_v46  ;;  %v1116_v21 = vshll.u32 %v3549_v63, %v1107_v18  ;;  %v1119_v34 = vshll.u32 %v3547_v1, %v1107_v18  ;;  %v2925_v42 = vpop.eup %2000  ;;  %vm2929_vm6 = vcmp.le.f32.partialorder %v989_v53, 0.7853982  ;;  %3601 = vst [vmem:[#allocation22_spill] sm:$0xff] %v2933_v9 }
 0x1bd   : > { %v964_v15 = vor.u32 4788187, %v963_v62  ;;  %v1052_v27 = vshll.u32 %v1051_v20, 30  ;;  %v1075_v59 = vsub.s32 4, %v1051_v20  ;;  %v1115_v25 = vor.u32 %v1114_v12, %v1113_v30  ;;  %v2935_v6 = vpop.eup %2002 }
 0x1be   : > { %v1118_v46 = vor.u32 %v1117_v45, %v1116_v21  ;;  %v1121_v13 = vor.u32 %v1120_v2, %v1119_v34  ;;  %v1122_v1 = vshll.u32 %v3558_v3, %v1107_v18  ;;  %v1123_v63 = vshrl.u32 %v3556_v10, %v1108_v11  ;;  %v2946_v45 = vpop.f32.mrb[9].mxu1 }
 0x1bf   : > { %v965_v62 = vand.u32 2147483647, %v964_v15  ;;  %v967_v56 = vcvt.s32.f32 %v960_v58  ;;  %v2939_v22 = vsub.s32 %v1049_v38, %v1052_v27  ;;  %v3602_v53 = vand.u32 2147483647, %v2507_v60  ;;  %v2943_v4 = vpop.eup %2004  ;;  %3605 = vst [vmem:[#allocation24_spill] sm:$0xff] %v2946_v45 }
 0x1c0   : > { %3603 = vst [vmem:[#allocation23_spill] sm:$0xff] %v2943_v4  ;;  %v3604_v30 = vmov 683565275   ;;  %v1124_v9 = vor.u32 %v1123_v63, %v1122_v1  ;;  %vm1125_vm7 = vcmp.lt.s32.totalorder %v1106_v29, 1  ;;  %vm1126_vm8 = vcmp.lt.s32.totalorder %v1106_v29, 2 }
 0x1c1   : > { %v1204_v39 = vand.u32 8388607, %v3602_v53  ;;  %v1109_v12 = vshrl.u32 %v3604_v30, %v1108_v11  ;;  %v968_v2 = vmul.f32 %v967_v56, %v965_v62  ;;  %v1055_v18 = vsub.s32 0, %v2939_v22 }
 0x1c2   : > { %v1076_v15 = vsel %vm991_vm5, %v1075_v59, %v1051_v20  ;;  %vm1128_vm9 = vcmp.lt.s32.totalorder %v1106_v29, 4  ;;  %vm1127_vm12 = vcmp.lt.s32.totalorder %v1106_v29, 3  ;;  %v1133_v58 = vsel %vm1125_vm7, %v1112_v40, %v1115_v25 }
 0x1c3   : > { %v1130_v38 = vsel %vm1128_vm9, %v1118_v46, 2102212464  ;;  %v1134_v21 = vsel %vm1128_vm9, %v1121_v13, 920167782  ;;  %v969_v34 = vxor.u32 2147483648, %v968_v2  ;;  %v1827_v27 = vmin.u32 %v1055_v18, %v2939_v22 }
 0x1c4   : > { %v1135_v11 = vsel %vm1127_vm12, %v1118_v46, %v1134_v21  ;;  %v1137_v63 = vsel %vm1125_vm7, %v1115_v25, %v1118_v46  ;;  %v1129_v1 = vsel %vm1125_vm7, %v1109_v12, %v1112_v40  ;;  %v1138_v10 = vsel %vm1128_vm9, %v1124_v9, 1326507024 }
 0x1c5   : > { %v1136_v53 = vsel %vm1126_vm8, %v1133_v58, %v1135_v11  ;;  %v1201_v56 = vshrl.u32 %v1200_v49, 23  ;;  %v970_v62 = vsel %vm887_vm10, %v969_v34, %v968_v2  ;;  %v1057_v3 = vclz %v1827_v27 }
 0x1c6   : > { %v1131_v20 = vsel %vm1127_vm12, %v1115_v25, %v1130_v38  ;;  %v1139_v59 = vsel %vm1127_vm12, %v1121_v13, %v1138_v10  ;;  %v1078_v45 = vsel %vm2929_vm6, 0, %v1076_v15  ;;  %v973_v40 = vsel %vm2834_vm14, %v2491_v43, %v970_v62 }
 0x1c7   : > { %v1140_v41 = vsel %vm1126_vm8, %v1137_v63, %v1139_v59  ;;  %v2959_v18 = vmul.u32.u64.low %v2901_v50, %v1136_v53  ;;  %v2960_v21 = vmul.u32.u64.high %v2901_v50, %v1136_v53, %v2959_v18  ;;  %v1828_v49 = vadd.s32 4294967294, %v1057_v3 }
 0x1c8   : > { %v2966_v9 = vmul.u32.u64.low %v2901_v50, %v1140_v41  ;;  %v2967_v46 = vmul.u32.u64.high %v2901_v50, %v1140_v41, %v2966_v9  ;;  %2006 = vsinq.f32 %v2888_v8  ;;  %v1132_v10 = vsel %vm1126_vm8, %v1129_v1, %v1131_v20 }
 0x1c9   : > { %v1834_v25 = vadd.s32 4294967169, %v1201_v56  ;;  %v3562_v13 = vand.u32 2147483647, %v2525_v36  ;;  %v1045_v12 = vadd.s32 %v2852_v55, %v2871_v31  ;;  %vm1829_vm13 = vcmp.lt.s32.totalorder %v1828_v49, 0 }
 0x1ca   : > { %v2974_v2 = vadd.s32 3, %v1078_v45  ;;  %v1205_v32 = vor.u32 8388608, %v1204_v39  ;;  %2008 = vcosq.f32 %v973_v40  ;;  %v1060_v3 = vsel %vm1829_vm13, 0, %v1828_v49 }
 0x1cb   : > { %v1151_v15 = vadd.s32 1, %v2960_v21  ;;  %v1207_v41 = vadd.s32 1, %v1834_v25  ;;  %2010 = vsinq.f32 %v973_v40  ;;  %v1061_v38 = vsub.s32 32, %v1060_v3 }
 0x1cc   : > { %3606 = vst [vmem:[#allocation25_spill] sm:$0xff] %v2974_v2  ;;  %v1065_v8 = vsub.s32 4294967266, %v1060_v3  ;;  %v1148_v29 = vmul.u32 %v2901_v50, %v1132_v10  ;;  %v1062_v58 = vshll.u32 %v2939_v22, %v1060_v3  ;;  %vm1150_vm10 = vc.u32 %v2967_v46, %v2959_v18 }
 0x1cd   : > { %vm1208_vm14 = vcmp.gt.s32.totalorder %v1207_v41, 0  ;;  %v1304_v55 = vand.u32 2139095040, %v2525_v36  ;;  %v1063_v31 = vshrl.u32 %v1045_v12, %v1061_v38  ;;  %v1152_v39 = vsel %vm1150_vm10, %v1151_v15, %v2960_v21 }
 0x1ce   : > { %v1066_v45 = vadd.s32 127, %v1065_v8  ;;  %v1209_v34 = vsel %vm1208_vm14, %v1207_v41, 0  ;;  %vm1095_vm15 = vcmp.lt.s32.totalorder %v2502_v54, 0  ;;  %v1153_v27 = vadd.s32 %v1152_v39, %v1148_v29 }
 0x1cf   : > { %v1211_v11 = vand.u32 31, %v1209_v34  ;;  %v2983_v63 = vshll.u32 %v1205_v32, 8  ;;  %v1308_v50 = vand.u32 8388607, %v3562_v13  ;;  %v1064_v22 = vor.u32 %v1063_v31, %v1062_v58 }
 0x1d0   : > { %v1067_v1 = vshll.u32 %v1066_v45, 23  ;;  %v2988_v53 = vadd.s32 %v2959_v18, %v2967_v46  ;;  %v1154_v62 = vadd.s32 536870912, %v1153_v27  ;;  %v1210_v20 = vshrl.u32 %v1209_v34, 5 }
 0x1d1   : > { %v1212_v59 = vsub.s32 32, %v1211_v11  ;;  %v1305_v21 = vshrl.u32 %v1304_v55, 23  ;;  %v1071_v49 = vcvt.s32.f32 %v1064_v22  ;;  %v1214_v9 = vshll.u32 %v3604_v30, %v1211_v11 }
 0x1d2   : > { %v1068_v40 = vor.u32 4788187, %v1067_v1  ;;  %v3607_v10 = vmov 2475754826   ;;  %v2993_v12 = vpop.eup %2006  ;;  %v1155_v32 = vshrl.u32 %v1154_v62, 30  ;;  %v1309_v4 = vor.u32 8388608, %v1308_v50 }
 0x1d3   : > { %v1217_v25 = vshll.u32 %v3607_v10, %v1211_v11  ;;  %3608 = vst [vmem:[#allocation26_spill] sm:$0xff] %v2993_v12  ;;  %v1215_v3 = vshrl.u32 %v3607_v10, %v1212_v59  ;;  %v3609_v15 = vmov 2131351028   ;;  %v3610_v38 = vand.u32 2147483647, %v2502_v54 }
 0x1d4   : > { %v1218_v18 = vshrl.u32 %v3609_v15, %v1212_v59  ;;  %v1220_v46 = vshll.u32 %v3609_v15, %v1211_v11  ;;  %v1069_v41 = vand.u32 2147483647, %v1068_v40  ;;  %v3613_v29 = vmov 2102212464   ;;  %v3007_v39 = vpop.eup %2008 }
 0x1d5   : > { %vm3000_vm0 = vcmp.le.f32.partialorder %v3610_v38, 0.7853982  ;;  %v1221_v58 = vshrl.u32 %v3613_v29, %v1212_v59  ;;  %v1223_v55 = vshll.u32 %v3613_v29, %v1211_v11  ;;  %v3614_v31 = vmov 920167782   ;;  %3615 = vst [vmem:[#allocation27_spill] sm:$0xff] %v3007_v39  ;;  %v3009_v13 = vpop.eup %2010 }
 0x1d6   : > { %v1224_v45 = vshrl.u32 %v3614_v31, %v1212_v59  ;;  %v1156_v34 = vshll.u32 %v1155_v32, 30  ;;  %v1179_v22 = vsub.s32 4, %v1155_v32  ;;  %v1216_v1 = vor.u32 %v1215_v3, %v1214_v9 }
 0x1d7   : > { %v1219_v62 = vor.u32 %v1218_v18, %v1217_v25  ;;  %v1072_v40 = vmul.f32 %v1071_v49, %v1069_v41  ;;  %v1222_v56 = vor.u32 %v1221_v58, %v1220_v46  ;;  %v3616_v2 = vmov 1326507024  }
 0x1d8   : > { %v1225_v38 = vor.u32 %v1224_v45, %v1223_v55  ;;  %v1227_v0 = vshrl.u32 %v3616_v2, %v1212_v59  ;;  %v3012_v43 = vsub.s32 %v1153_v27, %v1156_v34  ;;  %v1226_v28 = vshll.u32 %v3614_v31, %v1211_v11 }
 0x1d9   : > { %v1838_v17 = vadd.s32 4294967169, %v1305_v21  ;;  %v1073_v12 = vxor.u32 2147483648, %v1072_v40  ;;  %v1180_v39 = vsel %vm1095_vm15, %v1179_v22, %v1155_v32  ;;  %v1213_v9 = vshrl.u32 %v3604_v30, %v1212_v59 }
 0x1da   : > { %vm1229_vm1 = vcmp.lt.s32.totalorder %v1210_v20, 1  ;;  %v1159_v25 = vsub.s32 0, %v3012_v43  ;;  %v1228_v49 = vor.u32 %v1227_v0, %v1226_v28  ;;  %vm1231_vm2 = vcmp.lt.s32.totalorder %v1210_v20, 3 }
 0x1db   : > { %vm1232_vm11 = vcmp.lt.s32.totalorder %v1210_v20, 4  ;;  %v1074_v27 = vsel %vm991_vm5, %v1073_v12, %v1072_v40  ;;  %v1237_v11 = vsel %vm1229_vm1, %v1216_v1, %v1219_v62  ;;  %vm1230_vm3 = vcmp.lt.s32.totalorder %v1210_v20, 2 }
 0x1dc   : > { %v1234_v3 = vsel %vm1232_vm11, %v1222_v56, 2102212464  ;;  %v1238_v50 = vsel %vm1232_vm11, %v1225_v38, 920167782  ;;  %v1831_v21 = vmin.u32 %v1159_v25, %v3012_v43  ;;  %v3026_v32 = vshll.u32 %v1309_v4, 8 }
 0x1dd   : > { %v1239_v59 = vsel %vm1231_vm2, %v1222_v56, %v1238_v50  ;;  %v1233_v28 = vsel %vm1229_vm1, %v1213_v9, %v1216_v1  ;;  %v1235_v0 = vsel %vm1231_vm2, %v1219_v62, %v1234_v3  ;;  %v1241_v12 = vsel %vm1229_vm1, %v1219_v62, %v1222_v56 }
 0x1de   : > { %v1240_v18 = vsel %vm1230_vm3, %v1237_v11, %v1239_v59  ;;  %v1077_v46 = vsel %vm2929_vm6, %v2493_v44, %v1074_v27  ;;  %v1161_v41 = vclz %v1831_v21  ;;  %v1182_v58 = vsel %vm3000_vm0, 0, %v1180_v39 }
 0x1df   : > { %v1242_v55 = vsel %vm1232_vm11, %v1228_v49, 1326507024  ;;  %v3040_v45 = vmul.u32.u64.low %v2983_v63, %v1240_v18  ;;  %v3041_v34 = vmul.u32.u64.high %v2983_v63, %v1240_v18, %v3040_v45  ;;  %v1311_v22 = vadd.s32 1, %v1838_v17 }
 0x1e0   : > { %v1243_v4 = vsel %vm1231_vm2, %v1225_v38, %v1242_v55  ;;  %v1832_v1 = vadd.s32 4294967294, %v1161_v41  ;;  %v1236_v56 = vsel %vm1230_vm3, %v1233_v28, %v1235_v0  ;;  %v1408_v62 = vand.u32 2139095040, %v2587_v57 }
 0x1e1   : > { %v1244_v61 = vsel %vm1230_vm3, %v1241_v12, %v1243_v4  ;;  %2012 = vcosq.f32 %v1077_v46  ;;  %vm1312_vm4 = vcmp.gt.s32.totalorder %v1311_v22, 0  ;;  %v3051_v38 = vadd.s32 3, %v1182_v58 }
 0x1e2   : > { %v3048_v39 = vmul.u32.u64.low %v2983_v63, %v1244_v61  ;;  %v3049_v40 = vmul.u32.u64.high %v2983_v63, %v1244_v61, %v3048_v39  ;;  %2014 = vsinq.f32 %v1077_v46  ;;  %vm1833_vm5 = vcmp.lt.s32.totalorder %v1832_v1, 0 }
 0x1e3   : > { %v1313_v9 = vsel %vm1312_vm4, %v1311_v22, 0  ;;  %v1164_v25 = vsel %vm1833_vm5, 0, %v1832_v1  ;;  %v1252_v17 = vmul.u32 %v2983_v63, %v1236_v56  ;;  %v1255_v49 = vadd.s32 1, %v3041_v34 }
 0x1e4   : > { %v1315_v20 = vand.u32 31, %v1313_v9  ;;  %v1165_v27 = vsub.s32 32, %v1164_v25  ;;  %v1169_v3 = vsub.s32 4294967266, %v1164_v25  ;;  %v1409_v11 = vshrl.u32 %v1408_v62, 23 }
 0x1e5   : > { %v3617_v50 = vand.u32 2147483647, %v2587_v57  ;;  %v1166_v59 = vshll.u32 %v3012_v43, %v1164_v25  ;;  %vm1254_vm6 = vc.u32 %v3049_v40, %v3040_v45  ;;  %v3062_v28 = vshrl.u32 %v1313_v9, 5 }
 0x1e6   : > { %v1316_v0 = vsub.s32 32, %v1315_v20  ;;  %v1167_v63 = vshrl.u32 %v2988_v53, %v1165_v27  ;;  %v1170_v18 = vadd.s32 127, %v1169_v3  ;;  %vm1199_vm7 = vcmp.lt.s32.totalorder %v2507_v60, 0 }
 0x1e7   : > { %v3057_v21 = vand.u32 8388607, %v3617_v50  ;;  %v1256_v12 = vsel %vm1254_vm6, %v1255_v49, %v3041_v34  ;;  %v1318_v46 = vshll.u32 %v3604_v30, %v1315_v20  ;;  %v1321_v43 = vshll.u32 %v3607_v10, %v1315_v20 }
 0x1e8   : > { %v1257_v41 = vadd.s32 %v1256_v12, %v1252_v17  ;;  %v1319_v58 = vshrl.u32 %v3607_v10, %v1316_v0  ;;  %v1322_v55 = vshrl.u32 %v3609_v15, %v1316_v0  ;;  %v1168_v4 = vor.u32 %v1167_v63, %v1166_v59 }
 0x1e9   : > { %v1171_v22 = vshll.u32 %v1170_v18, 23  ;;  %v3618_v1 = vand.u32 2147483647, %v2507_v60  ;;  %v1324_v56 = vshll.u32 %v3609_v15, %v1315_v20  ;;  %v1325_v34 = vshrl.u32 %v3613_v29, %v1316_v0 }
 0x1ea   : > { %v1258_v61 = vadd.s32 536870912, %v1257_v41  ;;  %v1320_v62 = vor.u32 %v1319_v58, %v1318_v46  ;;  %v1323_v39 = vor.u32 %v1322_v55, %v1321_v43  ;;  %v1842_v9 = vadd.s32 4294967169, %v1409_v11 }
 0x1eb   : > { %vm3073_vm8 = vcmp.le.f32.partialorder %v3618_v1, 0.7853982  ;;  %v1172_v25 = vor.u32 4788187, %v1171_v22  ;;  %v1326_v17 = vor.u32 %v1325_v34, %v1324_v56  ;;  %v1327_v49 = vshll.u32 %v3613_v29, %v1315_v20  ;;  %v3081_v3 = vpop.eup %2012 }
 0x1ec   : > { %v1328_v27 = vshrl.u32 %v3614_v31, %v1316_v0  ;;  %v1175_v50 = vcvt.s32.f32 %v1168_v4  ;;  %v1259_v59 = vshrl.u32 %v1258_v61, 30  ;;  %v1317_v63 = vshrl.u32 %v3604_v30, %v1316_v0  ;;  %v3085_v12 = vpop.eup %2014 }
 0x1ed   : > { %v1331_v18 = vshrl.u32 %v3616_v2, %v1316_v0  ;;  %v1173_v1 = vand.u32 2147483647, %v1172_v25  ;;  %v1330_v11 = vshll.u32 %v3614_v31, %v1315_v20  ;;  %vm1333_vm9 = vcmp.lt.s32.totalorder %v3062_v28, 1 }
 0x1ee   : > { %v1329_v46 = vor.u32 %v1328_v27, %v1327_v49  ;;  %v1260_v58 = vshll.u32 %v1259_v59, 30  ;;  %v1283_v43 = vsub.s32 4, %v1259_v59  ;;  %vm1334_vm12 = vcmp.lt.s32.totalorder %v3062_v28, 2 }
 0x1ef   : > { %vm1336_vm13 = vcmp.lt.s32.totalorder %v3062_v28, 4  ;;  %v1176_v55 = vmul.f32 %v1175_v50, %v1173_v1  ;;  %v1332_v4 = vor.u32 %v1331_v18, %v1330_v11  ;;  %v1341_v0 = vsel %vm1333_vm9, %v1320_v62, %v1323_v39 }
 0x1f0   : > { %v1338_v22 = vsel %vm1336_vm13, %v1326_v17, 2102212464  ;;  %v3095_v56 = vsub.s32 %v1257_v41, %v1260_v58  ;;  %v1284_v20 = vsel %vm1199_vm7, %v1283_v43, %v1259_v59  ;;  %vm1335_vm10 = vcmp.lt.s32.totalorder %v3062_v28, 3 }
 0x1f1   : > { %v1342_v34 = vsel %vm1336_vm13, %v1329_v46, 920167782  ;;  %v1177_v61 = vxor.u32 2147483648, %v1176_v55  ;;  %v1337_v25 = vsel %vm1333_vm9, %v1317_v63, %v1320_v62  ;;  %v1339_v49 = vsel %vm1335_vm10, %v1323_v39, %v1338_v22 }
 0x1f2   : > { %v1343_v27 = vsel %vm1335_vm10, %v1326_v17, %v1342_v34  ;;  %v1263_v50 = vsub.s32 0, %v3095_v56  ;;  %v1286_v41 = vsel %vm3073_vm8, 0, %v1284_v20  ;;  %v1345_v59 = vsel %vm1333_vm9, %v1323_v39, %v1326_v17 }
 0x1f3   : > { %v1344_v18 = vsel %vm1334_vm12, %v1341_v0, %v1343_v27  ;;  %v1178_v1 = vsel %vm1095_vm15, %v1177_v61, %v1176_v55  ;;  %v1346_v11 = vsel %vm1336_vm13, %v1332_v4, 1326507024  ;;  %v1253_v58 = vadd.s32 %v3040_v45, %v3049_v40 }
 0x1f4   : > { %v3116_v62 = vmul.u32.u64.low %v3026_v32, %v1344_v18  ;;  %v3117_v63 = vmul.u32.u64.high %v3026_v32, %v1344_v18, %v3116_v62  ;;  %v1835_v43 = vmin.u32 %v1263_v50, %v3095_v56  ;;  %v1347_v22 = vsel %vm1335_vm10, %v1329_v46, %v1346_v11 }
 0x1f5   : > { %v1413_v0 = vor.u32 8388608, %v3057_v21  ;;  %v1181_v39 = vsel %vm3000_vm0, %v2502_v54, %v1178_v1  ;;  %v1340_v17 = vsel %vm1334_vm12, %v1337_v25, %v1339_v49  ;;  %v1348_v55 = vsel %vm1334_vm12, %v1345_v59, %v1347_v22 }
 0x1f6   : > { %v1415_v4 = vadd.s32 1, %v1842_v9  ;;  %v1265_v20 = vclz %v1835_v43  ;;  %v3131_v34 = vadd.s32 3, %v1286_v41  ;;  %v1359_v21 = vadd.s32 1, %v3117_v63 }
 0x1f7   : > { %v3134_v45 = vmul.u32.u64.low %v3026_v32, %v1348_v55  ;;  %v3135_v40 = vmul.u32.u64.high %v3026_v32, %v1348_v55, %v3134_v45  ;;  %v3139_v8 = vand.u32 3, %v2665_v5  ;;  %v566_v46 = vxor.u32 2147483648, %v2759_v37 }
 0x1f8   : > { %3621 = vst [vmem:[#allocation28_spill] sm:$0xff] %v3131_v34  ;;  %vm1416_vm14 = vcmp.gt.s32.totalorder %v1415_v4, 0  ;;  %2016 = vcosq.f32 %v1181_v39  ;;  %v1836_v61 = vadd.s32 4294967294, %v1265_v20  ;;  %v1356_v28 = vmul.u32 %v3026_v32, %v1340_v17 }
 0x1f9   : > { %v1417_v9 = vsel %vm1416_vm14, %v1415_v4, 0  ;;  %2018 = vsinq.f32 %v1181_v39  ;;  %v3143_v49 = vshll.u32 %v1413_v0, 8  ;;  %vm1358_vm0 = vc.u32 %v3135_v40, %v3116_v62 }
 0x1fa   : > { %v1419_v25 = vand.u32 31, %v1417_v9  ;;  %vm1837_vm15 = vcmp.lt.s32.totalorder %v1836_v61, 0  ;;  %v3148_v50 = vshrl.u32 %v1417_v9, 5  ;;  %vm565_vm1 = vcmp.eq.s32.totalorder %v3139_v8, 0 }
 0x1fb   : > { %v1268_v5 = vsel %vm1837_vm15, 0, %v1836_v61  ;;  %vm1303_vm2 = vcmp.lt.s32.totalorder %v2525_v36, 0  ;;  %v1360_v32 = vsel %vm1358_vm0, %v1359_v21, %v3117_v63  ;;  %v3154_v18 = vsel %vm565_vm1, %v2754_v16, %v566_v46 }
 0x1fc   : > { %v1420_v41 = vsub.s32 32, %v1419_v25  ;;  %v1269_v59 = vsub.s32 32, %v1268_v5  ;;  %v1273_v1 = vsub.s32 4294967266, %v1268_v5  ;;  %v3622_v11 = vand.u32 2147483647, %v2525_v36 }
 0x1fd   : > { %v1361_v22 = vadd.s32 %v1360_v32, %v1356_v28  ;;  %v1422_v0 = vshll.u32 %v3604_v30, %v1419_v25  ;;  %v1425_v63 = vshll.u32 %v3607_v10, %v1419_v25  ;;  %v1270_v4 = vshll.u32 %v3095_v56, %v1268_v5 }
 0x1fe   : > { %vm3158_vm11 = vcmp.le.f32.partialorder %v3622_v11, 0.7853982  ;;  %v1421_v39 = vshrl.u32 %v3604_v30, %v1420_v41  ;;  %v1423_v17 = vshrl.u32 %v3607_v10, %v1420_v41  ;;  %v1426_v55 = vshrl.u32 %v3609_v15, %v1420_v41 }
 0x1ff   : > { %v1271_v20 = vshrl.u32 %v1253_v58, %v1269_v59  ;;  %v1274_v45 = vadd.s32 127, %v1273_v1  ;;  %v1362_v21 = vadd.s32 536870912, %v1361_v22  ;;  %v1428_v9 = vshll.u32 %v3609_v15, %v1419_v25 }
 0x200   : > { %v1424_v46 = vor.u32 %v1423_v17, %v1422_v0  ;;  %v1427_v61 = vor.u32 %v1426_v55, %v1425_v63  ;;  %v1429_v28 = vshrl.u32 %v3613_v29, %v1420_v41  ;;  %v1432_v27 = vshrl.u32 %v3614_v31, %v1420_v41 }
 0x201   : > { %v1272_v32 = vor.u32 %v1271_v20, %v1270_v4  ;;  %v1275_v11 = vshll.u32 %v1274_v45, 23  ;;  %v1363_v30 = vshrl.u32 %v1362_v21, 30  ;;  %v1431_v10 = vshll.u32 %v3613_v29, %v1419_v25 }
 0x202   : > { %v1430_v34 = vor.u32 %v1429_v28, %v1428_v9  ;;  %v1434_v54 = vshll.u32 %v3614_v31, %v1419_v25  ;;  %v1435_v56 = vshrl.u32 %v3616_v2, %v1420_v41  ;;  %v3174_v58 = vpop.eup %2016  ;;  %vm1437_vm3 = vcmp.lt.s32.totalorder %v3148_v50, 1 }
 0x203   : > { %v1276_v5 = vor.u32 4788187, %v1275_v11  ;;  %v1364_v59 = vshll.u32 %v1363_v30, 30  ;;  %v1387_v1 = vsub.s32 4, %v1363_v30  ;;  %vm1519_vm4 = vcmp.gt.f32.partialorder %v2873_v14, 0.0  ;;  %v3178_v15 = vpop.eup %2018 }
 0x204   : > { %v1279_v0 = vcvt.s32.f32 %v1272_v32  ;;  %v1433_v17 = vor.u32 %v1432_v27, %v1431_v10  ;;  %v1436_v63 = vor.u32 %v1435_v56, %v1434_v54  ;;  %vm1438_vm5 = vcmp.lt.s32.totalorder %v3148_v50, 2 }
 0x205   : > { %vm564_vm6 = vcmp.lt.s32.totalorder %v3139_v8, 2  ;;  %v1277_v29 = vand.u32 2147483647, %v1276_v5  ;;  %v3182_v2 = vsub.s32 %v1361_v22, %v1364_v59  ;;  %v1388_v31 = vsel %vm1303_vm2, %v1387_v1, %v1363_v30 }
 0x206   : > { %vm1440_vm9 = vcmp.lt.s32.totalorder %v3148_v50, 4  ;;  %vm561_vm12 = vweird.f32 %v2474_v23  ;;  %v1390_v25 = vsel %vm3158_vm11, 0, %v1388_v31  ;;  %vm1439_vm13 = vcmp.lt.s32.totalorder %v3148_v50, 3 }
 0x207   : > { %v1441_v54 = vsel %vm1437_vm3, %v1421_v39, %v1424_v46  ;;  %v1442_v27 = vsel %vm1440_vm9, %v1430_v34, 2102212464  ;;  %v1280_v41 = vmul.f32 %v1279_v0, %v1277_v29  ;;  %v1367_v22 = vsub.s32 0, %v3182_v2 }
 0x208   : > { %v1443_v55 = vsel %vm1439_vm13, %v1427_v61, %v1442_v27  ;;  %v1445_v4 = vsel %vm1437_vm3, %v1424_v46, %v1427_v61  ;;  %v1446_v45 = vsel %vm1440_vm9, %v1433_v17, 920167782  ;;  %v1449_v21 = vsel %vm1437_vm3, %v1427_v61, %v1430_v34 }
 0x209   : > { %v1444_v20 = vsel %vm1438_vm5, %v1441_v54, %v1443_v55  ;;  %v1450_v9 = vsel %vm1440_vm9, %v1436_v63, 1326507024  ;;  %v1281_v28 = vxor.u32 2147483648, %v1280_v41  ;;  %v1839_v32 = vmin.u32 %v1367_v22, %v3182_v2  ;;  %v1539_v54 = vld [vmem:[%s2428_s25] sm:$0xff] }
 0x20a   : > { %v1447_v39 = vsel %vm1439_vm13, %v1430_v34, %v1446_v45  ;;  %v1451_v11 = vsel %vm1439_vm13, %v1433_v17, %v1450_v9  ;;  %v1460_v10 = vmul.u32 %v3143_v49, %v1444_v20  ;;  %vm568_vm10 = vcmp.eq.s32.totalorder %v3139_v8, 2  ;;  %v3641_v45 = vld [vmem:[#allocation21_spill] sm:$0xff] }
 0x20b   : > { %v1448_v30 = vsel %vm1438_vm5, %v1445_v4, %v1447_v39  ;;  %v1452_v46 = vsel %vm1438_vm5, %v1449_v21, %v1451_v11  ;;  %v1282_v61 = vsel %vm1199_vm7, %v1281_v28, %v1280_v41  ;;  %v1369_v56 = vclz %v1839_v32 }
 0x20c   : > { %v3210_v5 = vmul.u32.u64.low %v3143_v49, %v1452_v46  ;;  %v3211_v59 = vmul.u32.u64.high %v3143_v49, %v1452_v46, %v3210_v5  ;;  %v1285_v34 = vsel %vm3073_vm8, %v2507_v60, %v1282_v61  ;;  %v3625_v0 = vxor.u32 2147483648, %v2754_v16 }
 0x20d   : > { %v3217_v1 = vmul.u32.u64.low %v3143_v49, %v1448_v30  ;;  %v3218_v50 = vmul.u32.u64.high %v3143_v49, %v1448_v30, %v3217_v1  ;;  %v1357_v63 = vadd.s32 %v3116_v62, %v3135_v40  ;;  %v1840_v29 = vadd.s32 4294967294, %v1369_v56  ;;  %v1540_v30 = vld [vmem:[%s2428_s25 + $0x8] sm:$0xff] }
 0x20e   : > { %v570_v17 = vsel %vm568_vm10, %v3625_v0, %v2759_v37  ;;  %2020 = vcosq.f32 %v1285_v34  ;;  %v3230_v53 = vadd.s32 3, %v1390_v25  ;;  %v2223_v27 = vmov 0.033333335  }
 0x20f   : > { %v571_v31 = vsel %vm564_vm6, %v3154_v18, %v570_v17  ;;  %v1529_v16 = vsel %vm1519_vm4, 0.003, %v2223_v27  ;;  %2022 = vsinq.f32 %v1285_v34  ;;  %vm1841_vm7 = vcmp.lt.s32.totalorder %v1840_v29, 0 }
 0x210   : > { %v572_v49 = vsel %vm561_vm12, nan, %v571_v31  ;;  %vm1462_vm8 = vc.u32 %v3211_v59, %v3217_v1  ;;  %v1372_v62 = vsel %vm1841_vm7, 0, %v1840_v29  ;;  %v1463_v40 = vadd.s32 1, %v3218_v50 }
 0x211   : > { %v1509_v37 = vmul.f32 0.1, %v572_v49  ;;  %v1549_v8 = vmul.f32 %v1539_v54, %v1529_v16  ;;  %v667_v18 = vand.u32 3, %v2731_v52  ;;  %v1373_v23 = vsub.s32 32, %v1372_v62 }
 0x212   : > { %v1377_v25 = vsub.s32 4294967266, %v1372_v62  ;;  %vm665_vm14 = vweird.f32 %v2478_v26  ;;  %v1374_v22 = vshll.u32 %v3182_v2, %v1372_v62  ;;  %vm1407_vm15 = vcmp.lt.s32.totalorder %v2587_v57, 0 }
 0x213   : > { %v1559_v41 = vsel %vm1519_vm4, %v1509_v37, 0.0  ;;  %v1464_v55 = vsel %vm1462_vm8, %v1463_v40, %v3218_v50  ;;  %1589 = vst [vmem:[%s3248_s14] sm:$0xff] %v1549_v8  ;;  %vm668_vm0 = vcmp.lt.s32.totalorder %v667_v18, 2  ;;  %v1375_v52 = vshrl.u32 %v1357_v63, %v1373_v23 }
 0x214   : > { %v1569_v4 = vadd.f32 %v1559_v41, %v1549_v8  ;;  %v1378_v20 = vadd.s32 127, %v1377_v25  ;;  %v3626_v14 = vand.u32 2147483647, %v2587_v57  ;;  %v1465_v2 = vadd.s32 %v1464_v55, %v1460_v10  ;;  %v1541_v8 = vld [vmem:[%s2428_s25 + $0x10] sm:$0xff] }
 0x215   : > { %v670_v21 = vxor.u32 2147483648, %v2800_v48  ;;  %vm669_vm3 = vcmp.eq.s32.totalorder %v667_v18, 0  ;;  %vm672_vm4 = vcmp.eq.s32.totalorder %v667_v18, 2  ;;  %v673_v9 = vxor.u32 2147483648, %v2772_v51 }
 0x216   : > { %vm3253_vm1 = vcmp.le.f32.partialorder %v3626_v14, 0.7853982  ;;  %1579 = vst [vmem:[%s3259_s12] sm:$0xff] %v1569_v4  ;;  %vm1520_vm5 = vcmp.gt.f32.partialorder %v2883_v19, 0.0  ;;  %v1376_v28 = vor.u32 %v1375_v52, %v1374_v22  ;;  %v1379_v32 = vshll.u32 %v1378_v20, 23 }
 0x217   : > { %v1466_v39 = vadd.s32 536870912, %v1465_v2  ;;  %v671_v11 = vsel %vm669_vm3, %v2772_v51, %v670_v21  ;;  %v674_v46 = vsel %vm672_vm4, %v673_v9, %v2800_v48  ;;  %v1530_v10 = vsel %vm1520_vm5, 0.003, %v2223_v27 }
 0x218   : > { %v771_v61 = vand.u32 3, %v2734_v7  ;;  %v774_v56 = vxor.u32 2147483648, %v2935_v6  ;;  %v1380_v5 = vor.u32 4788187, %v1379_v32  ;;  %v1383_v34 = vcvt.s32.f32 %v1376_v28  ;;  %v3273_v17 = vpop.eup %2020  ;;  %v3630_v32 = vld [vmem:[#allocation23_spill] sm:$0xff] }
 0x219   : > { %v1467_v50 = vshrl.u32 %v1466_v39, 30  ;;  %v675_v0 = vsel %vm668_vm0, %v671_v11, %v674_v46  ;;  %v1550_v48 = vmul.f32 %v1540_v30, %v1530_v10  ;;  %v3277_v63 = vpop.eup %2022  ;;  %v777_v16 = vxor.u32 2147483648, %v2925_v42  ;;  %v1542_v11 = vld [vmem:[%s2428_s25 + $0x18] sm:$0xff]  ;;  %v3632_v10 = vld [vmem:[#allocation16_spill] sm:$0xff] }
 0x21a   : > { %v676_v51 = vsel %vm665_vm14, nan, %v675_v0  ;;  %vm772_vm6 = vcmp.lt.s32.totalorder %v771_v61, 2  ;;  %vm773_vm9 = vcmp.eq.s32.totalorder %v771_v61, 0  ;;  %v1381_v7 = vand.u32 2147483647, %v1380_v5  ;;  %v3631_v46 = vld [vmem:[#allocation17_spill] sm:$0xff] }
 0x21b   : > { %v1468_v29 = vshll.u32 %v1467_v50, 30  ;;  %v1491_v31 = vsub.s32 4, %v1467_v50  ;;  %v1510_v54 = vmul.f32 0.1, %v676_v51  ;;  %1590 = vst [vmem:[%s3248_s14 + $0x8] sm:$0xff] %v1550_v48  ;;  %v775_v49 = vsel %vm773_vm9, %v2925_v42, %v774_v56 }
 0x21c   : > { %vm776_vm12 = vcmp.eq.s32.totalorder %v771_v61, 2  ;;  %vm1521_vm13 = vcmp.gt.f32.partialorder %v2899_v24, 0.0  ;;  %v1384_v26 = vmul.f32 %v1383_v34, %v1381_v7  ;;  %vm769_vm10 = vweird.f32 %v2486_v33  ;;  %v3633_v34 = vld [vmem:[#allocation27_spill] sm:$0xff] }
 0x21d   : > { %v3283_v37 = vsub.s32 %v1465_v2, %v1468_v29  ;;  %v1492_v62 = vsel %vm1407_vm15, %v1491_v31, %v1467_v50  ;;  %v1560_v40 = vsel %vm1520_vm5, %v1510_v54, 0.0  ;;  %v778_v25 = vsel %vm776_vm12, %v777_v16, %v2935_v6 }
 0x21e   : > { %v1494_v18 = vsel %vm3253_vm1, 0, %v1492_v62  ;;  %v1570_v23 = vadd.f32 %v1560_v40, %v1550_v48  ;;  %v1531_v42 = vsel %vm1521_vm13, 0.003, %v2223_v27  ;;  %v1385_v41 = vxor.u32 2147483648, %v1384_v26  ;;  %v3634_v48 = vld [vmem:[#allocation14_spill] sm:$0xff] }
 0x21f   : > { %v1471_v22 = vsub.s32 0, %v3283_v37  ;;  %v779_v19 = vsel %vm772_vm6, %v775_v49, %v778_v25  ;;  %v1461_v55 = vadd.s32 %v3217_v1, %v3211_v59  ;;  %v1551_v52 = vmul.f32 %v1541_v8, %v1531_v42  ;;  %v3629_v59 = vld [vmem:[#allocation26_spill] sm:$0xff] }
 0x220   : > { %1580 = vst [vmem:[%s3259_s12 + $0x8] sm:$0xff] %v1570_v23  ;;  %v780_v4 = vsel %vm769_vm10, nan, %v779_v19  ;;  %v875_v6 = vand.u32 3, %v2879_v47  ;;  %v1386_v20 = vsel %vm1303_vm2, %v1385_v41, %v1384_v26  ;;  %v3306_v2 = vadd.s32 3, %v1494_v18  ;;  %v3635_v40 = vld [vmem:[#allocation18_spill] sm:$0xff] }
 0x221   : > { %v1843_v14 = vmin.u32 %v1471_v22, %v3283_v37  ;;  %v1511_v21 = vmul.f32 0.1, %v780_v4  ;;  %v1389_v33 = vsel %vm3158_vm11, %v2525_v36, %v1386_v20  ;;  %1591 = vst [vmem:[%s3248_s14 + $0x10] sm:$0xff] %v1551_v52  ;;  %vm873_vm7 = vweird.f32 %v2488_v35  ;;  %v1543_v8 = vld [vmem:[%s2428_s25 + $0x20] sm:$0xff] }
 0x222   : > { %vm876_vm8 = vcmp.lt.s32.totalorder %v875_v6, 2  ;;  %v878_v47 = vxor.u32 2147483648, %v3629_v59  ;;  %2024 = vcosq.f32 %v1389_v33  ;;  %vm877_vm2 = vcmp.eq.s32.totalorder %v875_v6, 0 }
 0x223   : > { %v1473_v1 = vclz %v1843_v14  ;;  %v1561_v9 = vsel %vm1521_vm13, %v1511_v21, 0.0  ;;  %vm880_vm14 = vcmp.eq.s32.totalorder %v875_v6, 2  ;;  %v881_v43 = vxor.u32 2147483648, %v3630_v32 }
 0x224   : > { %v1571_v28 = vadd.f32 %v1561_v9, %v1551_v52  ;;  %v879_v39 = vsel %vm877_vm2, %v3630_v32, %v878_v47  ;;  %2026 = vsinq.f32 %v1389_v33  ;;  %vm1522_vm11 = vcmp.gt.f32.partialorder %v3631_v46, 0.0  ;;  %v1544_v47 = vld [vmem:[%s2428_s25 + $0x28] sm:$0xff] }
 0x225   : > { %v1844_v30 = vadd.s32 4294967294, %v1473_v1  ;;  %v979_v61 = vand.u32 3, %v3632_v10  ;;  %v882_v56 = vsel %vm880_vm14, %v881_v43, %v3629_v59  ;;  %v1532_v24 = vsel %vm1522_vm11, 0.003, %v2223_v27  ;;  %v3637_v32 = vld [vmem:[#allocation19_spill] sm:$0xff] }
 0x226   : > { %1581 = vst [vmem:[%s3259_s12 + $0x10] sm:$0xff] %v1571_v28  ;;  %v982_v5 = vxor.u32 2147483648, %v3009_v13  ;;  %v985_v50 = vxor.u32 2147483648, %v3633_v34  ;;  %v883_v0 = vsel %vm876_vm8, %v879_v39, %v882_v56  ;;  %v1552_v51 = vmul.f32 %v1542_v11, %v1532_v24 }
 0x227   : > { %vm1845_vm0 = vcmp.lt.s32.totalorder %v1844_v30, 0  ;;  %vm977_vm3 = vweird.f32 %v3634_v48  ;;  %v884_v29 = vsel %vm873_vm7, nan, %v883_v0  ;;  %vm980_vm4 = vcmp.lt.s32.totalorder %v979_v61, 2 }
 0x228   : > { %v1476_v7 = vsel %vm1845_vm0, 0, %v1844_v30  ;;  %vm981_vm5 = vcmp.eq.s32.totalorder %v979_v61, 0  ;;  %v1512_v49 = vmul.f32 0.1, %v884_v29  ;;  %1592 = vst [vmem:[%s3248_s14 + $0x18] sm:$0xff] %v1552_v51  ;;  %vm984_vm6 = vcmp.eq.s32.totalorder %v979_v61, 2 }
 0x229   : > { %v1477_v31 = vsub.s32 32, %v1476_v7  ;;  %v1481_v54 = vsub.s32 4294967266, %v1476_v7  ;;  %v1478_v16 = vshll.u32 %v3283_v37, %v1476_v7  ;;  %v983_v26 = vsel %vm981_vm5, %v3633_v34, %v982_v5  ;;  %v3638_v5 = vld [vmem:[#allocation15_spill] sm:$0xff] }
 0x22a   : > { %v986_v62 = vsel %vm984_vm6, %v985_v50, %v3009_v13  ;;  %vm1523_vm9 = vcmp.gt.f32.partialorder %v3635_v40, 0.0  ;;  %v1562_v23 = vsel %vm1522_vm11, %v1512_v49, 0.0  ;;  %v3636_v13 = vld [vmem:[#allocation25_spill] sm:$0xff]  ;;  %vm1081_vm12 = vweird.f32 %v2493_v44  ;;  %v3639_v50 = vld [vmem:[#allocation20_spill] sm:$0xff] }
 0x22b   : > { %v1479_v18 = vshrl.u32 %v1461_v55, %v1477_v31  ;;  %v1482_v35 = vadd.s32 127, %v1481_v54  ;;  %v987_v25 = vsel %vm980_vm4, %v983_v26, %v986_v62  ;;  %v1572_v42 = vadd.f32 %v1562_v23, %v1552_v51  ;;  %v3640_v31 = vld [vmem:[#allocation28_spill] sm:$0xff] }
 0x22c   : > { %v988_v41 = vsel %vm977_vm3, nan, %v987_v25  ;;  %v1533_v37 = vsel %vm1523_vm9, 0.003, %v2223_v27  ;;  %v1083_v22 = vand.u32 3, %v3636_v13  ;;  %v3346_v19 = vpop.eup %2024  ;;  %v1086_v20 = vxor.u32 2147483648, %v3085_v12 }
 0x22d   : > { %v1480_v55 = vor.u32 %v1479_v18, %v1478_v16  ;;  %v1483_v4 = vshll.u32 %v1482_v35, 23  ;;  %v1513_v52 = vmul.f32 0.1, %v988_v41  ;;  %v1553_v6 = vmul.f32 %v1543_v8, %v1533_v37  ;;  %1582 = vst [vmem:[%s3259_s12 + $0x18] sm:$0xff] %v1572_v42  ;;  %v1546_v18 = vld [vmem:[%s2428_s25 + $0x38] sm:$0xff] }
 0x22e   : > { %vm1084_vm13 = vcmp.lt.s32.totalorder %v1083_v22, 2  ;;  %vm1085_vm10 = vcmp.eq.s32.totalorder %v1083_v22, 0  ;;  %v3351_v14 = vpop.eup %2026  ;;  %vm1088_vm7 = vcmp.eq.s32.totalorder %v1083_v22, 2  ;;  %v1089_v59 = vxor.u32 2147483648, %v3081_v3 }
 0x22f   : > { %v1484_v21 = vor.u32 4788187, %v1483_v4  ;;  %v1563_v33 = vsel %vm1523_vm9, %v1513_v52, 0.0  ;;  %1593 = vst [vmem:[%s3248_s14 + $0x20] sm:$0xff] %v1553_v6  ;;  %v1487_v1 = vcvt.s32.f32 %v1480_v55  ;;  %v1087_v28 = vsel %vm1085_vm10, %v3081_v3, %v1086_v20 }
 0x230   : > { %v1573_v9 = vadd.f32 %v1563_v33, %v1553_v6  ;;  %vm1524_vm8 = vcmp.gt.f32.partialorder %v3637_v32, 0.0  ;;  %v1090_v43 = vsel %vm1088_vm7, %v1089_v59, %v3085_v12  ;;  %v1187_v30 = vand.u32 3, %v3051_v38  ;;  %v1545_v12 = vld [vmem:[%s2428_s25 + $0x30] sm:$0xff]  ;;  %v1548_v59 = vld [vmem:[%s2428_s25 + $0x48] sm:$0xff] }
 0x231   : > { %v1485_v39 = vand.u32 2147483647, %v1484_v21  ;;  %v1534_v11 = vsel %vm1524_vm8, 0.003, %v2223_v27  ;;  %v1091_v46 = vsel %vm1084_vm13, %v1087_v28, %v1090_v43  ;;  %v1190_v61 = vxor.u32 2147483648, %v3178_v15  ;;  %v3642_v6 = vld [vmem:[#allocation22_spill] sm:$0xff] }
 0x232   : > { %1583 = vst [vmem:[%s3259_s12 + $0x20] sm:$0xff] %v1573_v9  ;;  %v1554_v10 = vmul.f32 %v1544_v47, %v1534_v11  ;;  %v1193_v3 = vxor.u32 2147483648, %v3174_v58  ;;  %v1092_v24 = vsel %vm1081_vm12, nan, %v1091_v46  ;;  %vm1185_vm2 = vweird.f32 %v3638_v5 }
 0x233   : > { %v1488_v56 = vmul.f32 %v1487_v1, %v1485_v39  ;;  %vm1189_vm14 = vcmp.eq.s32.totalorder %v1187_v30, 0  ;;  %v1514_v34 = vmul.f32 0.1, %v1092_v24  ;;  %vm1192_vm11 = vcmp.eq.s32.totalorder %v1187_v30, 2  ;;  %v3643_v1 = vld [vmem:[#allocation24_spill] sm:$0xff] }
 0x234   : > { %1594 = vst [vmem:[%s3248_s14 + $0x28] sm:$0xff] %v1554_v10  ;;  %v1191_v38 = vsel %vm1189_vm14, %v3174_v58, %v1190_v61  ;;  %vm1525_vm0 = vcmp.gt.f32.partialorder %v3639_v50, 0.0  ;;  %vm1188_vm3 = vcmp.lt.s32.totalorder %v1187_v30, 2  ;;  %v1194_v51 = vsel %vm1192_vm11, %v1193_v3, %v3178_v15 }
 0x235   : > { %v1489_v0 = vxor.u32 2147483648, %v1488_v56  ;;  %v1535_v44 = vsel %vm1525_vm0, 0.003, %v2223_v27  ;;  %v1564_v48 = vsel %vm1524_vm8, %v1514_v34, 0.0  ;;  %v1195_v7 = vsel %vm1188_vm3, %v1191_v38, %v1194_v51 }
 0x236   : > { %v1555_v29 = vmul.f32 %v1545_v12, %v1535_v44  ;;  %v1291_v58 = vand.u32 3, %v3640_v31  ;;  %v1574_v49 = vadd.f32 %v1564_v48, %v1554_v10  ;;  %v1196_v15 = vsel %vm1185_vm2, nan, %v1195_v7 }
 0x237   : > { %v1490_v54 = vsel %vm1407_vm15, %v1489_v0, %v1488_v56  ;;  %v1294_v16 = vxor.u32 2147483648, %v3277_v63  ;;  %v1515_v62 = vmul.f32 0.1, %v1196_v15  ;;  %vm1289_vm4 = vweird.f32 %v2507_v60 }
 0x238   : > { %v1493_v26 = vsel %vm3253_vm1, %v2587_v57, %v1490_v54  ;;  %1595 = vst [vmem:[%s3248_s14 + $0x30] sm:$0xff] %v1555_v29  ;;  %vm1293_vm5 = vcmp.eq.s32.totalorder %v1291_v58, 0  ;;  %1584 = vst [vmem:[%s3259_s12 + $0x28] sm:$0xff] %v1574_v49  ;;  %vm1292_vm6 = vcmp.lt.s32.totalorder %v1291_v58, 2  ;;  %v1297_v8 = vxor.u32 2147483648, %v3273_v17 }
 0x239   : > { %2028 = vcosq.f32 %v1493_v26  ;;  %v1295_v40 = vsel %vm1293_vm5, %v3273_v17, %v1294_v16  ;;  %v1565_v35 = vsel %vm1525_vm0, %v1515_v62, 0.0  ;;  %vm1296_vm15 = vcmp.eq.s32.totalorder %v1291_v58, 2 }
 0x23a   : > { %2030 = vsinq.f32 %v1493_v26  ;;  %vm1526_vm1 = vcmp.gt.f32.partialorder %v3641_v45, 0.0  ;;  %v1575_v23 = vadd.f32 %v1565_v35, %v1555_v29  ;;  %v1298_v25 = vsel %vm1296_vm15, %v1297_v8, %v3277_v63  ;;  %v1547_v63 = vld [vmem:[%s2428_s25 + $0x40] sm:$0xff] }
 0x23b   : > { %v1536_v42 = vsel %vm1526_vm1, 0.003, %v2223_v27  ;;  %v1395_v41 = vand.u32 3, %v3230_v53  ;;  %v1299_v17 = vsel %vm1292_vm6, %v1295_v40, %v1298_v25  ;;  %v1398_v13 = vxor.u32 2147483648, %v3351_v14 }
 0x23c   : > { %v1556_v37 = vmul.f32 %v1546_v18, %v1536_v42  ;;  %v1401_v22 = vxor.u32 2147483648, %v3346_v19  ;;  %1585 = vst [vmem:[%s3259_s12 + $0x30] sm:$0xff] %v1575_v23  ;;  %v1300_v55 = vsel %vm1289_vm4, nan, %v1299_v17  ;;  %vm1527_vm10 = vcmp.gt.f32.partialorder %v3642_v6, 0.0 }
 0x23d   : > { %vm1396_vm9 = vcmp.lt.s32.totalorder %v1395_v41, 2  ;;  %vm1397_vm12 = vcmp.eq.s32.totalorder %v1395_v41, 0  ;;  %vm1400_vm13 = vcmp.eq.s32.totalorder %v1395_v41, 2  ;;  %v1516_v4 = vmul.f32 0.1, %v1300_v55 }
 0x23e   : > { %1596 = vst [vmem:[%s3248_s14 + $0x38] sm:$0xff] %v1556_v37  ;;  %v1399_v53 = vsel %vm1397_vm12, %v3346_v19, %v1398_v13  ;;  %v1402_v52 = vsel %vm1400_vm13, %v1401_v22, %v3351_v14  ;;  %vm1393_vm7 = vweird.f32 %v2525_v36  ;;  %v1537_v20 = vsel %vm1527_vm10, 0.003, %v2223_v27 }
 0x23f   : > { %v1403_v60 = vsel %vm1396_vm9, %v1399_v53, %v1402_v52  ;;  %v1566_v21 = vsel %vm1526_vm1, %v1516_v4, 0.0  ;;  %v1557_v19 = vmul.f32 %v1547_v63, %v1537_v20  ;;  %v1499_v14 = vand.u32 3, %v3306_v2 }
 0x240   : > { %v1404_v33 = vsel %vm1393_vm7, nan, %v1403_v60  ;;  %v1576_v47 = vadd.f32 %v1566_v21, %v1556_v37  ;;  %vm1528_vm8 = vcmp.gt.f32.partialorder %v3643_v1, 0.0 }
 0x241   : > { %v1517_v36 = vmul.f32 0.1, %v1404_v33  ;;  %1597 = vst [vmem:[%s3248_s14 + $0x40] sm:$0xff] %v1557_v19  ;;  %v1538_v9 = vsel %vm1528_vm8, 0.003, %v2223_v27  ;;  %vm1504_vm2 = vcmp.eq.s32.totalorder %v1499_v14, 2 }
 0x242   : > { %1586 = vst [vmem:[%s3259_s12 + $0x38] sm:$0xff] %v1576_v47  ;;  %v1558_v39 = vmul.f32 %v1548_v59, %v1538_v9  ;;  %vm1501_vm14 = vcmp.eq.s32.totalorder %v1499_v14, 0 }
 0x243   : > { %v2029_v28 = vpop.eup %2028  ;;  %v1567_v32 = vsel %vm1527_vm10, %v1517_v36, 0.0 }
 0x244   : > { %v2031_v2 = vpop.eup %2030  ;;  %v1577_v27 = vadd.f32 %v1567_v32, %v1557_v19  ;;  %v1505_v43 = vxor.u32 2147483648, %v2029_v28  ;;  %1598 = vst [vmem:[%s3248_s14 + $0x48] sm:$0xff] %v1558_v39 }
 0x245   : > { %v1502_v11 = vxor.u32 2147483648, %v2031_v2 }
 0x246   : > { %1587 = vst [vmem:[%s3259_s12 + $0x40] sm:$0xff] %v1577_v27  ;;  %v1506_v30 = vsel %vm1504_vm2, %v1505_v43, %v2031_v2 }
 0x247   : > { %2105 = shalt.err (!%p2102_p11)
}
 0x248   : > { %s2106_s24 = scalar_lea.hbm %s3438_s13, 1280  ;;  %s2110_s14 = scalar_lea.hbm %s3540_s4, 2560 }
 0x249   : > { %p2107_p1 = scmp.ne.s32.totalorder %s3438_s13, %s2106_s24  ;;  %p2111_p5 = scmp.lt.u32.totalorder %s3438_s13, %s3540_s4 }
 0x24a   : > { %p2112_p4 = scmp.lt.u32.totalorder %s2110_s14, %s2106_s24  ;;  %p2114_p0 = scmp.lt.u32.totalorder %s2106_s24, %s3438_s13 }
 0x24b   : > { %p2108_p6 = pnand %p2107_p1, %p3644_p3 }
 0x24c   : > { %p2113_p8 = por %p2112_p4, %p2111_p5 }
 0x24d   : > { %p2109_p2 = pneg %p2108_p6 }
 0x24e   : > { %p2115_p12 = por %p2114_p0, %p2113_p8 }
 0x250   : > { %p2116_p13 = pnand %p2115_p12, %p2109_p2 }
 0x252   : > { %2119 = shalt.err (!%p2116_p13)
}
 0x253   : > { %s2225_s27 = smov 256   ;;  %s2226_s8 = smov 16   ;;  %vm1500_vm11 = vcmp.lt.s32.totalorder %v1499_v14, 2  ;;  %v1503_v46 = vsel %vm1501_vm14, %v2029_v28, %v1502_v11  ;;  %vm1497_vm0 = vweird.f32 %v2587_v57 }
 0x254   : > { %1913 = dma.vmem_to_hbm [thread:$0]  (%p3644_p3), %s3440_s6, 1280, %s3438_s13, %s1605_s22, %s2225_s27, %s2225_s27, %s2226_s8   ;;  %v1507_v10 = vsel %vm1500_vm11, %v1503_v46, %v1506_v30 }
 0x255   : > { %v1508_v61 = vsel %vm1497_vm0, nan, %v1507_v10  ;;  %s1620_s11 = sshll.u32 %s3259_s12, 4  ;;  %s3481_s21 = scalar_lea.hbm %s3539_s3, %s1906_s5  ;;  %s3483_s11 = int_to_ptr.vmem [resolvable:$true] %s1620_s11 }
 0x256   : > { %v1518_v3 = vmul.f32 0.1, %v1508_v61  ;;  %s1600_s6 = scalar_lea.sflag [#allocation4], %s2415_s26  ;;  %s2120_s13 = scalar_lea.vmem %s3483_s11, 1280 }
 0x257   : > { %p2121_p7 = scmp.ne.s32.totalorder %s3483_s11, %s2120_s13  ;;  %s2227_s22 = smov [#allocation7]  }
 0x258   : > { %v1568_v56 = vsel %vm1528_vm8, %v1518_v3, 0.0  ;;  %s2124_s9 = sshll.u32 %s2227_s22, 4  ;;  %s2125_s9 = int_to_ptr.vmem [resolvable:$false] %s2124_s9 }
 0x259   : > { %v1578_v24 = vadd.f32 %v1568_v56, %v1558_v39  ;;  %p2122_p10 = pnand %p2121_p7, %p3644_p3  ;;  %s2126_s18 = scalar_lea.vmem %s2125_s9, 2560 }
 0x25a   : > { %p2127_p11 = scmp.lt.s32.totalorder %s3483_s11, %s2125_s9  ;;  %p2128_p1 = scmp.lt.s32.totalorder %s2126_s18, %s2120_s13 }
 0x25b   : > { %1588 = vst [vmem:[%s3259_s12 + $0x48] sm:$0xff] %v1578_v24  ;;  %p2123_p9 = pneg %p2122_p10 }
 0x25c   : > { %p2129_p6 = por %p2128_p1, %p2127_p11 }
 0x25e   : > { %p2130_p2 = pnand %p2129_p6, %p2123_p9 }
 0x260   : > { %2133 = shalt.err (!%p2130_p2)
}
 0x261   : > { %s2134_s12 = scalar_lea.hbm %s3481_s21, 1280  ;;  %s2138_s25 = scalar_lea.hbm %s3539_s3, 2560 }
 0x262   : > { %p2135_p5 = scmp.ne.s32.totalorder %s3481_s21, %s2134_s12  ;;  %p2139_p0 = scmp.lt.u32.totalorder %s3481_s21, %s3539_s3 }
 0x263   : > { %p2140_p12 = scmp.lt.u32.totalorder %s2138_s25, %s2134_s12  ;;  %p2142_p7 = scmp.lt.u32.totalorder %s2134_s12, %s3481_s21 }
 0x264   : > { %p2136_p4 = pnand %p2135_p5, %p3644_p3 }
 0x265   : > { %p2141_p13 = por %p2140_p12, %p2139_p0 }
 0x266   : > { %p2137_p8 = pneg %p2136_p4 }
 0x267   : > { %p2143_p10 = por %p2142_p7, %p2141_p13 }
 0x269   : > { %p2144_p9 = pnand %p2143_p10, %p2137_p8 }
 0x26b   : > { %2147 = shalt.err (!%p2144_p9)
}
 0x26c   : > { %1912 = dma.vmem_to_hbm [thread:$0]  (%p3644_p3), %s3483_s11, 1280, %s3481_s21, %s1600_s6, %s2225_s27, %s2225_s27, %s2226_s8  }
 0x26d PF: > { %s1653_s24 = sand.u32 1, %s2190_s15   ;;  %p3645_p11 = scmp.ne.s32.totalorder %s3575_s30, 0 }
 0x26e   : > { %p3646_p1 = scmp.ge.s32.totalorder %s2210_s20, 2  ;;  %s1654_s13 = scalar_lea.sflag [#allocation4], %s1653_s24 }
 0x270   : > { %p1924_p6 = pnand %p3646_p1, %p3645_p11 }
 0x272   : > { %2181 = dma.done.wait (!%p1924_p6), %s1654_s13, 1280  }
 0x273   : > { %2183 = vsyncadd (!%p1924_p6), %s1654_s13, 4294966016  ;;  %s1663_s28 = scalar_lea.sflag [#allocation9], %s1653_s24 }
 0x274   : > { %2185 = dma.done.wait (!%p1924_p6), %s1663_s28, 1280  }
 0x275   : > { %2187 = vsyncadd (!%p1924_p6), %s1663_s28, 4294966016  ;;  %s27_s20 = sadd.s32 1, %s2210_s20   ;;  %s3647_s15 = smov %s2194_s16 }
 0x276   : > { %p24_p2 = scmp.ge.s32.totalorder %s27_s20, 4   ;;  %s3648_s16 = smov %s2198_s17 }
 0x277   : > { %s3649_s17 = smov %s2309_s29  ;;  %s3650_s18 = smov %s2206_s19 }
 0x278   : > { %s3651_s19 = smov %s3653_s23  ;;  %26 = sbr.rel (!%p24_p2) target bundleno = 10 (0xa), region = 107 }
 0x27f   :  { %1668 = vsyncpa [#allocation3], 1 }
 0x280   :  { %1670 = vsyncpa [#allocation3 + $0x1], 1 }
 0x281   :  { %1671 = vsyncpa [#allocation6], 1 }
 0x282   :  { %1673 = vsyncpa [#allocation6 + $0x1], 1 }
 0x283   :  { %1674 = vsyncpa [#allocation4], 1 }
 0x284   :  { %1676 = vsyncpa [#allocation4 + $0x1], 1 }
 0x285   :  { %1677 = vsyncpa [#allocation9], 1 }
 0x286   :  { %1679 = vsyncpa [#allocation9 + $0x1], 1 }

</bundles_post_ra>
